<compile_context>
chip_gen: v5e
topology: v5e:2x2
jax: 0.10.0
libtpu: 0.0.40
codegen_flags: <defaults>
</compile_context>

<pallas_src>
import numpy as np
import jax
import jax.numpy as jnp
from jax.experimental import pallas as pl
from jax.experimental.pallas import tpu as pltpu

EPS = 1e-5
NEG_SLOPE = 0.2
K = 7          # kernel size everywhere in this module
HALO = 8       # halo rows per side (covers the 7/8-row receptive-field overhang)


def _round_up(x, m):
    return (x + m - 1) // m * m


# ----------------------- parameter init (PyTorch-layout) ---------------------
def init_params(key, in_ch, out_ch):
    cmid = out_ch * 2
    ks = jax.random.split(key, 24)
    n = lambda k, s: 0.1 * jax.random.normal(k, s, jnp.float32)
    p = dict(
        w1=n(ks[0], (cmid, in_ch, K)), b1=n(ks[1], (cmid,)),
        g1=1.0 + n(ks[2], (cmid,)), be1=n(ks[3], (cmid,)),
        m1=n(ks[4], (cmid,)), v1=0.9 + jnp.abs(n(ks[5], (cmid,))),
        w2=n(ks[6], (cmid, cmid, K)), b2=n(ks[7], (cmid,)),
        g2=1.0 + n(ks[8], (cmid,)), be2=n(ks[9], (cmid,)),
        m2=n(ks[10], (cmid,)), v2=0.9 + jnp.abs(n(ks[11], (cmid,))),
        wt=n(ks[12], (cmid, out_ch, K)), bt=n(ks[13], (out_ch,)),
        g3=1.0 + n(ks[14], (out_ch,)), be3=n(ks[15], (out_ch,)),
        m3=n(ks[16], (out_ch,)), v3=0.9 + jnp.abs(n(ks[17], (out_ch,))),
    )
    return p


# ------------------- BN folding + TPU weight-slab packing --------------------
def pack_params(p):
    """Fold inference BatchNorm into the convs, pad channels to lane widths and
    build the im2col / fused-transposed-conv weight slabs.  Call ONCE, outside
    the jitted forward -- everything here is static."""
    bf16 = jnp.bfloat16
    s1 = p["g1"] / jnp.sqrt(p["v1"] + EPS)
    s2 = p["g2"] / jnp.sqrt(p["v2"] + EPS)
    s3 = p["g3"] / jnp.sqrt(p["v3"] + EPS)
    # PyTorch Conv1d weight (Co, Ci, K) -> (K, Ci, Co), BN scale folded into columns.
    w1 = jnp.transpose(p["w1"], (2, 1, 0)) * s1[None, None, :]
    b1 = ((p["b1"] - p["m1"]) * s1 + p["be1"])[None, :]
    w2 = jnp.transpose(p["w2"], (2, 1, 0)) * s2[None, None, :]
    b2 = ((p["b2"] - p["m2"]) * s2 + p["be2"])[None, :]
    # PyTorch ConvTranspose1d weight (Ci, Co, K) -> (K, Ci, Co)
    wt = jnp.transpose(p["wt"], (2, 0, 1)) * s3[None, None, :]
    bt = ((p["bt"] - p["m3"]) * s3 + p["be3"])[None, :]

    cin, cmid = w1.shape[1], w1.shape[2]
    cout = wt.shape[2]
    cin_p = _round_up(cin, 8)
    col1_p = _round_up(K * cin_p, 128)    # lane width of the wrapper-side conv1 im2col
    cmid_p = _round_up(cmid, 128)
    cout_p = _round_up(cout, 128)

    def pad_to(a, shape):
        return jnp.pad(a, [(0, s - d) for d, s in zip(a.shape, shape)])

    # conv1 im2col slab: rows are tap-major (k, ci), zero-padded to col1_p.
    w1s = pad_to(w1, (K, cin_p, cmid_p)).reshape(K * cin_p, cmid_p)
    w1s = pad_to(w1s, (col1_p, cmid_p)).astype(bf16)
    # conv2 im2col slab.
    w2s = pad_to(w2, (K, cmid_p, cmid_p)).reshape(K * cmid_p, cmid_p).astype(bf16)

    # ConvTranspose1d k=7 s=2 p=3 op=1:
    #   out[2m]   = wt[1]@y[m+1] + wt[3]@y[m] + wt[5]@y[m-1]
    #   out[2m+1] = wt[0]@y[m+2] + wt[2]@y[m+1] + wt[4]@y[m] + wt[6]@y[m-1]
    # Shared LHS blocks (ocols) = [y[m+2], y[m+1], y[m], y[m-1]]; even taps become a
    # zero-padded column block so BOTH parities are one (4*Cmid_p, 2*Cout_p) matmul.
    wtp = pad_to(wt, (K, cmid_p, cout_p))
    w_even = jnp.concatenate(
        [jnp.zeros((cmid_p, cout_p), wtp.dtype), wtp[1], wtp[3], wtp[5]], axis=0)
    w_odd = jnp.concatenate([wtp[0], wtp[2], wtp[4], wtp[6]], axis=0)
    wf = jnp.concatenate([w_even, w_odd], axis=1).astype(bf16)      # (4*Cmid_p, 2*Cout_p)
    btp = pad_to(bt, (1, cout_p))
    btf = jnp.concatenate([btp, btp], axis=1)                        # (1, 2*Cout_p) f32

    return dict(w1=w1s, b1=pad_to(b1, (1, cmid_p)),
                w2=w2s, b2=pad_to(b2, (1, cmid_p)),
                wf=wf, btf=btf,
                cin=cin, cin_p=cin_p, col1_p=col1_p, cmid_p=cmid_p,
                cout=cout, cout_p=cout_p)


# ------------------------------- forward pass --------------------------------
def upsample_layer_t(x_ncl, skip_ncl, w, *, tile_l=256,
                     vmem_limit_bytes=64 * 1024 * 1024):
    """x_ncl: (N, in_ch, L); skip_ncl: (N, skip_ch, 2L) -> (N, out_ch+skip_ch, 2L)."""
    N, Cin, L = x_ncl.shape
    assert Cin == w["cin"]
    cin_p, col1_p = w["cin_p"], w["col1_p"]
    Cmid_p, Cout, Cout_p = w["cmid_p"], w["cout"], w["cout_p"]
    f32, bf16 = jnp.float32, jnp.bfloat16

    tl = min(tile_l, L)
    # tl multiple of 16: bf16 output block is (tl, 2*Cout_p) along the time axis.
    assert tl % 16 == 0 and L % tl == 0, "L must be a multiple of the (16-aligned) tile"
    # TODO(synk): no ragged-tail path -- L must divide evenly into tiles.
    nt = L // tl
    W = tl + 2 * HALO      # x rows per tile window (halo on both sides)
    Lv1 = W - 6            # conv1 rows computed ("valid" over the window)
    Lv2 = W - 12           # conv2 rows computed; == tl + 4

    # ---- wrapper-side layout glue (absorbed by adjacent layers in a full model) ----
    x_nlc = jnp.transpose(x_ncl, (0, 2, 1))                               # (N, L, Cin)
    x_nlc = jnp.pad(x_nlc, ((0, 0), (HALO, HALO), (0, cin_p - Cin)))
    xwin = jnp.stack([x_nlc[:, i * tl:i * tl + W, :] for i in range(nt)], axis=1)
    # conv1 im2col built wrapper-side (input is tiny): (N, nt, Lv1, col1_p) in bf16,
    # lane-dense so the kernel's first matmul needs no sub-128-lane packing.
    xcols = jnp.concatenate([xwin[:, :, k:k + Lv1, :] for k in range(K)], axis=-1)
    xcols = jnp.pad(xcols, ((0, 0), (0, 0), (0, 0), (0, col1_p - K * cin_p)))
    xcols = xcols.astype(bf16)

    def kernel(xc_ref, w1_ref, b1_ref, w2_ref, b2_ref, wf_ref, btf_ref, o_ref):
        i = pl.program_id(0)

        def leaky(v):
            return jnp.where(v > 0, v, NEG_SLOPE * v)

        # conv1 + BN + LeakyReLU: one im2col matmul (Lv1, col1_p) @ (col1_p, Cmid_p).
        y1 = jnp.dot(xc_ref[...], w1_ref[...], preferred_element_type=f32)
        y1 = leaky(y1 + b1_ref[...])
        # Zero rows whose global time is outside [0, L): conv2's 'same' padding must
        # see zeros there, not conv-of-zero-input activations.  Only first/last tile
        # actually clip; cost is a single select per stage.
        r1 = jax.lax.broadcasted_iota(jnp.int32, (Lv1, 1), 0) + (i * tl - 5)
        y1 = jnp.where(jnp.logical_and(r1 >= 0, r1 < L), y1, 0.0)
        y1b = y1.astype(bf16)          # cast once; im2col below is built in bf16

        # conv2 + BN + LeakyReLU: (Lv2, 7*Cmid_p) @ (7*Cmid_p, Cmid_p).
        cols2 = jnp.concatenate([y1b[k:k + Lv2, :] for k in range(K)], axis=1)
        y2 = jnp.dot(cols2, w2_ref[...], preferred_element_type=f32)
        y2 = leaky(y2 + b2_ref[...])
        r2 = jax.lax.broadcasted_iota(jnp.int32, (Lv2, 1), 0) + (i * tl - 2)
        y2 = jnp.where(jnp.logical_and(r2 >= 0, r2 < L), y2, 0.0)
        y2b = y2.astype(bf16)

        # ConvTranspose1d k=7 s=2 p=3 op=1 + BN + LeakyReLU.
        # y2 row p corresponds to global time i*tl + p - 2; shared LHS blocks are
        # [y[m+2], y[m+1], y[m], y[m-1]].  One fused matmul yields even|odd outputs
        # side-by-side -> single lane-dense (tl, 2*Cout_p) store.
        ocols = jnp.concatenate([y2b[4:4 + tl], y2b[3:3 + tl],
                                 y2b[2:2 + tl], y2b[1:1 + tl]], axis=1)
        both = jnp.dot(ocols, wf_ref[...], preferred_element_type=f32)
        both = leaky(both + btf_ref[...])
        o_ref[...] = both.astype(o_ref.dtype)

    grid_spec = pltpu.PrefetchScalarGridSpec(
        num_scalar_prefetch=0,
        grid=(nt, N),   # time-tiles leading: balanced megacore split even when N == 1
        in_specs=[
            pl.BlockSpec((None, None, Lv1, col1_p), lambda i, n: (n, i, 0, 0)),
            pl.BlockSpec((col1_p, Cmid_p), lambda i, n: (0, 0)),
            pl.BlockSpec((1, Cmid_p), lambda i, n: (0, 0)),
            pl.BlockSpec((K * Cmid_p, Cmid_p), lambda i, n: (0, 0)),
            pl.BlockSpec((1, Cmid_p), lambda i, n: (0, 0)),
            pl.BlockSpec((4 * Cmid_p, 2 * Cout_p), lambda i, n: (0, 0)),
            pl.BlockSpec((1, 2 * Cout_p), lambda i, n: (0, 0)),
        ],
        out_specs=pl.BlockSpec((None, tl, 2 * Cout_p), lambda i, n: (n, i, 0)),
    )

    out = pl.pallas_call(
        kernel,
        # bf16 writeback: the data already went through a bf16 MXU, and the output is
        # the dominant HBM stream.
        out_shape=jax.ShapeDtypeStruct((N, L, 2 * Cout_p), bf16),
        grid_spec=grid_spec,
        compiler_params=pltpu.CompilerParams(
            dimension_semantics=("parallel", "parallel"),
            vmem_limit_bytes=vmem_limit_bytes),
    )(xcols, w["w1"], w["b1"], w["w2"], w["b2"], w["wf"], w["btf"])

    # (N, L, 2*Cout_p) -> (N, 2L, Cout_p) is a FREE row-major reshape that interleaves
    # the even/odd time parities; then drop channel padding, return to NCL and concat
    # the skip (skip values stay in their own dtype, untouched).
    up = out.reshape(N, 2 * L, Cout_p)[:, :, :Cout]
    up_ncl = jnp.transpose(up, (0, 2, 1)).astype(skip_ncl.dtype)
    return jnp.concatenate([up_ncl, skip_ncl], axis=1)


# ------------------------------ pure-JAX ref ---------------------------------
def _leaky(y):
    return jnp.where(y > 0, y, NEG_SLOPE * y)


def _bn(y, g, b, m, v):
    return (y - m[None, :, None]) * (g / jnp.sqrt(v + EPS))[None, :, None] \
        + b[None, :, None]


def _conv1d(x, w, b, pad):
    y = jax.lax.conv_general_dilated(x, w, (1,), [(pad, pad)],
                                     dimension_numbers=("NCH", "OIH", "NCH"))
    return y + b[None, :, None]


def _convT1d(x, w_pt, b, stride, pad, out_pad):
    k = w_pt.shape[-1]
    w = jnp.transpose(jnp.flip(w_pt, axis=-1), (1, 0, 2))  # (Co, Ci, K)
    y = jax.lax.conv_general_dilated(
        x, w, (1,), [(k - 1 - pad, k - 1 - pad + out_pad)],
        lhs_dilation=(stride,), dimension_numbers=("NCH", "OIH", "NCH"))
    return y + b[None, :, None]


def reference_forward(x, skip, p):
    y = _leaky(_bn(_conv1d(x, p["w1"], p["b1"], 3), p["g1"], p["be1"], p["m1"], p["v1"]))
    y = _leaky(_bn(_conv1d(y, p["w2"], p["b2"], 3), p["g2"], p["be2"], p["m2"], p["v2"]))
    y = _leaky(_bn(_convT1d(y, p["wt"], p["bt"], 2, 3, 1), p["g3"], p["be3"], p["m3"], p["v3"]))
    return jnp.concatenate([y, skip], axis=1)


# ---------------------------------- main -------------------------------------
if __name__ == "__main__":
    N, in_ch, out_ch, L = 2, 8, 4, 32

    key = jax.random.PRNGKey(0)
    kx, ks, kp = jax.random.split(key, 3)
    x = jax.random.normal(kx, (N, in_ch, L), jnp.float32)          # NCL
    skip = jax.random.normal(ks, (N, out_ch, 2 * L), jnp.float32)  # NCL

    params = init_params(kp, in_ch, out_ch)
    packed = pack_params(params)        # fold BN + pad/cast ONCE, outside the forward

    # tile_l=16 -> 2 L-tiles: exercises the halo / boundary-mask logic.
    out = upsample_layer_t(x, skip, packed, tile_l=16)
    out = jax.block_until_ready(out)

    ref = jax.block_until_ready(reference_forward(x, skip, params))

    assert out.shape == (N, 2 * out_ch, 2 * L), out.shape
    # bf16 MXU inputs + bf16 writeback (f32 accumulation) -> tolerance loosened vs f32.
    np.testing.assert_allclose(np.asarray(out), np.asarray(ref),
                               rtol=3e-2, atol=3e-2)
    print("KERNEL_OK")
</pallas_src>

<mosaic_0001>
module attributes {stable_mosaic.version = 11 : i64} {
  func.func @kernel(%arg0: i32, %arg1: i32, %arg2: memref<1x1x26x128xbf16, #tpu.memory_space<vmem>>, %arg3: memref<128x128xbf16, #tpu.memory_space<vmem>>, %arg4: memref<1x128xf32, #tpu.memory_space<vmem>>, %arg5: memref<896x128xbf16, #tpu.memory_space<vmem>>, %arg6: memref<1x128xf32, #tpu.memory_space<vmem>>, %arg7: memref<512x256xbf16, #tpu.memory_space<vmem>>, %arg8: memref<1x256xf32, #tpu.memory_space<vmem>>, %arg9: memref<1x16x256xbf16, #tpu.memory_space<vmem>>) attributes {dimension_semantics = [#tpu.dimension_semantics<parallel>, #tpu.dimension_semantics<parallel>], iteration_bounds = array<i64: 2, 2>, scalar_prefetch = 0 : i64, scratch_operands = 0 : i64, tpu.core_type = #tpu.core_type<tc>, window_params = [{transform_indices = @transform_0, window_bounds = array<i64: 1, 1, 26, 128>}, {pipeline_mode = #tpu.pipeline_mode<synchronous>, transform_indices = @transform_1, window_bounds = array<i64: 128, 128>}, {pipeline_mode = #tpu.pipeline_mode<synchronous>, transform_indices = @transform_2, window_bounds = array<i64: 1, 128>}, {pipeline_mode = #tpu.pipeline_mode<synchronous>, transform_indices = @transform_3, window_bounds = array<i64: 896, 128>}, {pipeline_mode = #tpu.pipeline_mode<synchronous>, transform_indices = @transform_4, window_bounds = array<i64: 1, 128>}, {pipeline_mode = #tpu.pipeline_mode<synchronous>, transform_indices = @transform_5, window_bounds = array<i64: 512, 256>}, {pipeline_mode = #tpu.pipeline_mode<synchronous>, transform_indices = @transform_6, window_bounds = array<i64: 1, 256>}, {transform_indices = @transform_7, window_bounds = array<i64: 1, 16, 256>}]} {
    %c0 = arith.constant 0 : index
    %c0_0 = arith.constant 0 : index
    %c0_1 = arith.constant 0 : index
    %c0_2 = arith.constant 0 : index
    %0 = vector.load %arg2[%c0, %c0_0, %c0_1, %c0_2] : memref<1x1x26x128xbf16, #tpu.memory_space<vmem>>, vector<1x1x26x128xbf16>
    %1 = vector.shape_cast %0 : vector<1x1x26x128xbf16> to vector<26x128xbf16>
    %c0_3 = arith.constant 0 : index
    %c0_4 = arith.constant 0 : index
    %2 = vector.load %arg3[%c0_3, %c0_4] : memref<128x128xbf16, #tpu.memory_space<vmem>>, vector<128x128xbf16>
    %cst = arith.constant dense<0.000000e+00> : vector<26x128xf32>
    %3 = tpu.matmul %1, %2, %cst {dimension_numbers = #tpu.dot_dimension_numbers<[1], [0], [0], [1], [0, 0, 1, 1], [], []>} : vector<26x128xbf16>, vector<128x128xbf16>, vector<26x128xf32> -> vector<26x128xf32>
    %c0_5 = arith.constant 0 : index
    %c0_6 = arith.constant 0 : index
    %4 = vector.load %arg4[%c0_5, %c0_6] : memref<1x128xf32, #tpu.memory_space<vmem>>, vector<1x128xf32>
    %5 = vector.broadcast %4 : vector<1x128xf32> to vector<26x128xf32>
    %6 = arith.addf %3, %5 : vector<26x128xf32>
    %cst_7 = arith.constant 0.000000e+00 : f32
    %7 = vector.broadcast %cst_7 : f32 to vector<26x128xf32>
    %8 = arith.cmpf ogt, %6, %7 : vector<26x128xf32>
    %cst_8 = arith.constant 2.000000e-01 : f32
    %9 = vector.broadcast %cst_8 : f32 to vector<26x128xf32>
    %10 = arith.mulf %9, %6 : vector<26x128xf32>
    %11 = arith.select %8, %6, %10 : vector<26x128xi1>, vector<26x128xf32>
    %12 = tpu.iota {dimensions = array<i32: 0>} : vector<26x1xi32>
    %c16_i32 = arith.constant 16 : i32
    %13 = arith.muli %arg0, %c16_i32 : i32
    %c5_i32 = arith.constant 5 : i32
    %14 = arith.subi %13, %c5_i32 : i32
    %15 = vector.broadcast %14 : i32 to vector<26x1xi32>
    %16 = arith.addi %12, %15 : vector<26x1xi32>
    %c0_i32 = arith.constant 0 : i32
    %17 = vector.broadcast %c0_i32 : i32 to vector<26x1xi32>
    %18 = arith.cmpi sge, %16, %17 : vector<26x1xi32>
    %c32_i32 = arith.constant 32 : i32
    %19 = vector.broadcast %c32_i32 : i32 to vector<26x1xi32>
    %20 = arith.cmpi slt, %16, %19 : vector<26x1xi32>
    %21 = arith.andi %18, %20 : vector<26x1xi1>
    %cst_9 = arith.constant 0.000000e+00 : f32
    %22 = vector.shape_cast %21 : vector<26x1xi1> to vector<26x1xi1>
    %23 = vector.broadcast %22 : vector<26x1xi1> to vector<26x128xi1>
    %24 = vector.broadcast %cst_9 : f32 to vector<26x128xf32>
    %25 = arith.select %23, %11, %24 : vector<26x128xi1>, vector<26x128xf32>
    %26 = arith.truncf %25 : vector<26x128xf32> to vector<26x128xbf16>
    %27 = vector.extract_strided_slice %26 {offsets = [0, 0], sizes = [20, 128], strides = [1, 1]} : vector<26x128xbf16> to vector<20x128xbf16>
    %28 = vector.extract_strided_slice %26 {offsets = [1, 0], sizes = [20, 128], strides = [1, 1]} : vector<26x128xbf16> to vector<20x128xbf16>
    %29 = vector.extract_strided_slice %26 {offsets = [2, 0], sizes = [20, 128], strides = [1, 1]} : vector<26x128xbf16> to vector<20x128xbf16>
    %30 = vector.extract_strided_slice %26 {offsets = [3, 0], sizes = [20, 128], strides = [1, 1]} : vector<26x128xbf16> to vector<20x128xbf16>
    %31 = vector.extract_strided_slice %26 {offsets = [4, 0], sizes = [20, 128], strides = [1, 1]} : vector<26x128xbf16> to vector<20x128xbf16>
    %32 = vector.extract_strided_slice %26 {offsets = [5, 0], sizes = [20, 128], strides = [1, 1]} : vector<26x128xbf16> to vector<20x128xbf16>
    %33 = vector.extract_strided_slice %26 {offsets = [6, 0], sizes = [20, 128], strides = [1, 1]} : vector<26x128xbf16> to vector<20x128xbf16>
    %34 = tpu.concatenate %27, %28, %29, %30, %31, %32, %33 in 1 : vector<20x128xbf16>, vector<20x128xbf16>, vector<20x128xbf16>, vector<20x128xbf16>, vector<20x128xbf16>, vector<20x128xbf16>, vector<20x128xbf16> -> vector<20x896xbf16>
    %c0_10 = arith.constant 0 : index
    %c0_11 = arith.constant 0 : index
    %35 = vector.load %arg5[%c0_10, %c0_11] : memref<896x128xbf16, #tpu.memory_space<vmem>>, vector<896x128xbf16>
    %cst_12 = arith.constant dense<0.000000e+00> : vector<20x128xf32>
    %36 = tpu.matmul %34, %35, %cst_12 {dimension_numbers = #tpu.dot_dimension_numbers<[1], [0], [0], [1], [0, 0, 1, 1], [], []>} : vector<20x896xbf16>, vector<896x128xbf16>, vector<20x128xf32> -> vector<20x128xf32>
    %c0_13 = arith.constant 0 : index
    %c0_14 = arith.constant 0 : index
    %37 = vector.load %arg6[%c0_13, %c0_14] : memref<1x128xf32, #tpu.memory_space<vmem>>, vector<1x128xf32>
    %38 = vector.broadcast %37 : vector<1x128xf32> to vector<20x128xf32>
    %39 = arith.addf %36, %38 : vector<20x128xf32>
    %cst_15 = arith.constant 0.000000e+00 : f32
    %40 = vector.broadcast %cst_15 : f32 to vector<20x128xf32>
    %41 = arith.cmpf ogt, %39, %40 : vector<20x128xf32>
    %cst_16 = arith.constant 2.000000e-01 : f32
    %42 = vector.broadcast %cst_16 : f32 to vector<20x128xf32>
    %43 = arith.mulf %42, %39 : vector<20x128xf32>
    %44 = arith.select %41, %39, %43 : vector<20x128xi1>, vector<20x128xf32>
    %45 = tpu.iota {dimensions = array<i32: 0>} : vector<20x1xi32>
    %c16_i32_17 = arith.constant 16 : i32
    %46 = arith.muli %arg0, %c16_i32_17 : i32
    %c2_i32 = arith.constant 2 : i32
    %47 = arith.subi %46, %c2_i32 : i32
    %48 = vector.broadcast %47 : i32 to vector<20x1xi32>
    %49 = arith.addi %45, %48 : vector<20x1xi32>
    %c0_i32_18 = arith.constant 0 : i32
    %50 = vector.broadcast %c0_i32_18 : i32 to vector<20x1xi32>
    %51 = arith.cmpi sge, %49, %50 : vector<20x1xi32>
    %c32_i32_19 = arith.constant 32 : i32
    %52 = vector.broadcast %c32_i32_19 : i32 to vector<20x1xi32>
    %53 = arith.cmpi slt, %49, %52 : vector<20x1xi32>
    %54 = arith.andi %51, %53 : vector<20x1xi1>
    %cst_20 = arith.constant 0.000000e+00 : f32
    %55 = vector.shape_cast %54 : vector<20x1xi1> to vector<20x1xi1>
    %56 = vector.broadcast %55 : vector<20x1xi1> to vector<20x128xi1>
    %57 = vector.broadcast %cst_20 : f32 to vector<20x128xf32>
    %58 = arith.select %56, %44, %57 : vector<20x128xi1>, vector<20x128xf32>
    %59 = arith.truncf %58 : vector<20x128xf32> to vector<20x128xbf16>
    %60 = vector.extract_strided_slice %59 {offsets = [4, 0], sizes = [16, 128], strides = [1, 1]} : vector<20x128xbf16> to vector<16x128xbf16>
    %61 = vector.extract_strided_slice %59 {offsets = [3, 0], sizes = [16, 128], strides = [1, 1]} : vector<20x128xbf16> to vector<16x128xbf16>
    %62 = vector.extract_strided_slice %59 {offsets = [2, 0], sizes = [16, 128], strides = [1, 1]} : vector<20x128xbf16> to vector<16x128xbf16>
    %63 = vector.extract_strided_slice %59 {offsets = [1, 0], sizes = [16, 128], strides = [1, 1]} : vector<20x128xbf16> to vector<16x128xbf16>
    %64 = tpu.concatenate %60, %61, %62, %63 in 1 : vector<16x128xbf16>, vector<16x128xbf16>, vector<16x128xbf16>, vector<16x128xbf16> -> vector<16x512xbf16>
    %c0_21 = arith.constant 0 : index
    %c0_22 = arith.constant 0 : index
    %65 = vector.load %arg7[%c0_21, %c0_22] : memref<512x256xbf16, #tpu.memory_space<vmem>>, vector<512x256xbf16>
    %cst_23 = arith.constant dense<0.000000e+00> : vector<16x256xf32>
    %66 = tpu.matmul %64, %65, %cst_23 {dimension_numbers = #tpu.dot_dimension_numbers<[1], [0], [0], [1], [0, 0, 1, 1], [], []>} : vector<16x512xbf16>, vector<512x256xbf16>, vector<16x256xf32> -> vector<16x256xf32>
    %c0_24 = arith.constant 0 : index
    %c0_25 = arith.constant 0 : index
    %67 = vector.load %arg8[%c0_24, %c0_25] : memref<1x256xf32, #tpu.memory_space<vmem>>, vector<1x256xf32>
    %68 = vector.broadcast %67 : vector<1x256xf32> to vector<16x256xf32>
    %69 = arith.addf %66, %68 : vector<16x256xf32>
    %cst_26 = arith.constant 0.000000e+00 : f32
    %70 = vector.broadcast %cst_26 : f32 to vector<16x256xf32>
    %71 = arith.cmpf ogt, %69, %70 : vector<16x256xf32>
    %cst_27 = arith.constant 2.000000e-01 : f32
    %72 = vector.broadcast %cst_27 : f32 to vector<16x256xf32>
    %73 = arith.mulf %72, %69 : vector<16x256xf32>
    %74 = arith.select %71, %69, %73 : vector<16x256xi1>, vector<16x256xf32>
    %75 = arith.truncf %74 : vector<16x256xf32> to vector<16x256xbf16>
    %c0_28 = arith.constant 0 : index
    %c0_29 = arith.constant 0 : index
    %c0_30 = arith.constant 0 : index
    %76 = vector.load %arg9[%c0_28, %c0_29, %c0_30] : memref<1x16x256xbf16, #tpu.memory_space<vmem>>, vector<1x16x256xbf16>
    %77 = vector.shape_cast %76 : vector<1x16x256xbf16> to vector<16x256xbf16>
    %78 = vector.shape_cast %75 : vector<16x256xbf16> to vector<1x16x256xbf16>
    tpu.vector_store %arg9[%c0_28, %c0_29, %c0_30], %78 {strides = array<i32>} : memref<1x16x256xbf16, #tpu.memory_space<vmem>>, vector<1x16x256xbf16>,
    return
  }
  func.func @transform_0(%arg0: i32, %arg1: i32) -> (i32, i32, i32, i32) {
    %c0_i32 = arith.constant 0 : i32
    %c0_i32_0 = arith.constant 0 : i32
    %c0_i32_1 = arith.constant 0 : i32
    return %arg1, %arg0, %c0_i32, %c0_i32_0 : i32, i32, i32, i32
  }
  func.func @transform_1(%arg0: i32, %arg1: i32) -> (i32, i32) {
    %c0_i32 = arith.constant 0 : i32
    %c0_i32_0 = arith.constant 0 : i32
    %c0_i32_1 = arith.constant 0 : i32
    return %c0_i32, %c0_i32_0 : i32, i32
  }
  func.func @transform_2(%arg0: i32, %arg1: i32) -> (i32, i32) {
    %c0_i32 = arith.constant 0 : i32
    %c0_i32_0 = arith.constant 0 : i32
    %c0_i32_1 = arith.constant 0 : i32
    return %c0_i32, %c0_i32_0 : i32, i32
  }
  func.func @transform_3(%arg0: i32, %arg1: i32) -> (i32, i32) {
    %c0_i32 = arith.constant 0 : i32
    %c0_i32_0 = arith.constant 0 : i32
    %c0_i32_1 = arith.constant 0 : i32
    return %c0_i32, %c0_i32_0 : i32, i32
  }
  func.func @transform_4(%arg0: i32, %arg1: i32) -> (i32, i32) {
    %c0_i32 = arith.constant 0 : i32
    %c0_i32_0 = arith.constant 0 : i32
    %c0_i32_1 = arith.constant 0 : i32
    return %c0_i32, %c0_i32_0 : i32, i32
  }
  func.func @transform_5(%arg0: i32, %arg1: i32) -> (i32, i32) {
    %c0_i32 = arith.constant 0 : i32
    %c0_i32_0 = arith.constant 0 : i32
    %c0_i32_1 = arith.constant 0 : i32
    return %c0_i32, %c0_i32_0 : i32, i32
  }
  func.func @transform_6(%arg0: i32, %arg1: i32) -> (i32, i32) {
    %c0_i32 = arith.constant 0 : i32
    %c0_i32_0 = arith.constant 0 : i32
    %c0_i32_1 = arith.constant 0 : i32
    return %c0_i32, %c0_i32_0 : i32, i32
  }
  func.func @transform_7(%arg0: i32, %arg1: i32) -> (i32, i32, i32) {
    %c0_i32 = arith.constant 0 : i32
    %c0_i32_0 = arith.constant 0 : i32
    return %arg1, %arg0, %c0_i32 : i32, i32, i32
  }
}

</mosaic_0001>

<bundles_post_ra>
// kernel: tpu_custom_call.1
= control target key start
LH: loop header
LB: loop body
LE: loop exit
PB: predicated region body
PF: predicated region fallthrough
CT: control target
= control target key end

     0   :  { %12 = vsyncpa [#allocation3], 0  ;;  %s3182_s0 = inlined_call_operand.vmem [shape: bf16[2,2,26,128], index: 0, kind: input, shape index: {}]   ;;  %s3183_s1 = inlined_call_operand.vmem [shape: bf16[128,128], index: 1, kind: input, shape index: {}]   ;;  %s3184_s2 = inlined_call_operand.vmem [shape: f32[1,128], index: 2, kind: input, shape index: {}]   ;;  %s3185_s3 = inlined_call_operand.hbm [shape: bf16[896,128], index: 3, kind: input, shape index: {}]   ;;  %s3186_s4 = inlined_call_operand.vmem [shape: f32[1,128], index: 4, kind: input, shape index: {}]   ;;  %s3187_s5 = inlined_call_operand.hbm [shape: bf16[512,256], index: 5, kind: input, shape index: {}]   ;;  %s3188_s6 = inlined_call_operand.vmem [shape: f32[1,256], index: 6, kind: input, shape index: {}]   ;;  %s3189_s7 = inlined_call_operand.hbm [shape: bf16[2,32,256], index: 7, kind: output, shape index: {}]  }
   0x1   :  { %13 = vsyncpa [#allocation6], 0 }
   0x2   :  { %14 = vsyncpa [#allocation4], 0 }
   0x3   :  { %16 = vsyncpa [#allocation4 + $0x1], 0  ;;  %s2862_s24 = smov 0   ;;  %s2864_s25 = smov 0  }
   0x4   :  { %s2866_s26 = smov 0   ;;  %s2868_s27 = smov 0  }
   0x5   :  { %s2870_s28 = smov 0   ;;  %s2872_s29 = smov 0  }
   0x6   :  { %s2874_s30 = smov 0   ;;  %s2876_s8 = smov 0  }
   0x7 LB: > { %3195 = sst [smem:[#allocation11_spill]] %s2804_s29  ;;  %s1876_s9 = sadd.s32 4294967295, %s2812_s8   ;;  %s2812_s8 = sphi %s2876_s8, %s22_s8   ;;  %s2808_s30 = sphi %s2874_s30, %s3210_s30   ;;  %s2804_s29 = sphi %s2872_s29, %s3209_s29   ;;  %s2800_s28 = sphi %s2870_s28, %s3208_s28   ;;  %s2796_s27 = sphi %s2868_s27, %s3207_s27   ;;  %s2792_s26 = sphi %s2866_s26, %s3213_s26   ;;  %s2788_s25 = sphi %s2864_s25, %s3212_s25   ;;  %s2784_s24 = sphi %s2862_s24, %s3211_s24  }
   0x8   : > { %3196 = sst [smem:[#allocation12_spill]] %s2808_s30  ;;  %s1877_s10 = sadd.s32 4294967294, %s2812_s8  }
   0x9   : > { %s31_s11 = sadd.s32 1, %s2804_s29  ;;  %s34_s12 = sadd.s32 1, %s2808_s30 }
   0xa   : > { %p32_p0 = scmp.ge.s32.totalorder %s31_s11, 2  ;;  %s197_s13 = sadd.s32 1, %s2792_s26 }
   0xb   : > { %p207_p1 = scmp.ne.s32.totalorder %s2792_s26, %s2788_s25  ;;  %p208_p2 = scmp.eq.s32.totalorder %s1876_s9, 3 }
   0xc   : > { %s3215_s11 = smov (%p32_p0, %s31_s11), 0  ;;  %s3217_s12 = smov (!%p32_p0, %s34_s12), %s2808_s30 }
   0xd   : > { %3197 = sst [smem:[#allocation13_spill]] %s3215_s11  ;;  %s192_s14 = ssub.s32 %s2804_s29, %s3215_s11 }
   0xe   : > { %p2914_p3 = por %p208_p2, %p207_p1  ;;  %p36_p4 = scmp.ge.s32.totalorder %s3217_s12, 2 }
   0xf   : > { %p213_p5 = scmp.ne.s32.totalorder %s2788_s25, %s2784_s24  ;;  %p214_p6 = scmp.eq.s32.totalorder %s1877_s10, 3 }
  0x10   : > { %p1878_p7 = scmp.ge.s32.totalorder %s2812_s8, 1  ;;  %s3219_s12 = smov (%p36_p4, %s3217_s12), 0 }
  0x11   : > { %3199 = sst [smem:[#allocation14_spill]] %s3219_s12  ;;  %p2923_p8 = por %p214_p6, %p213_p5 }
  0x12   : > { %p221_p9 = scmp.lt.s32.totalorder %s2812_s8, 5  ;;  %s193_s17 = ssub.s32 %s2808_s30, %s3219_s12 }
  0x13   : > { %s3200_s16 = scalar_select %p2923_p8, 1, 0 }
  0x14   : > { %s194_s18 = sor.u32 %s193_s17, %s192_s14  ;;  %p2930_p10 = pnand %p1878_p7, %p221_p9 }
  0x15   : > { %3201 = sst [smem:[#allocation15_spill]] %s3200_s16  ;;  %p195_p11 = scmp.eq.s32.totalorder %s194_s18, 0 }
  0x16   : > { %p2934_p12 = scmp.eq.s32.totalorder %s1876_s9, 0  ;;  %p2560_p13 = pneg %p2930_p10 }
  0x17   : > { %s238_s23 = sshll.u32 %s3185_s3, 4  ;;  %s2814_s14 = smov [#allocation2]   ;;  %s239_s23 = int_to_ptr.hbm [resolvable:$true] %s238_s23 }
  0x18   : > { %s2944_s10 = scalar_select %p195_p11, %s2792_s26, %s197_s13  }
  0x19   : > { %s240_s17 = sshll.u32 %s2814_s14, 4  ;;  %p2561_p0 = pnand %p2934_p12, %p2560_p13  ;;  %s241_s17 = int_to_ptr.vmem [resolvable:$true] %s240_s17 }
  0x1a   : > { %s2815_s18 = smov 64   ;;  %s2816_s9 = smov 4  }
  0x1b   : > { %2563 = dma.hbm_to_vmem [thread:$0]  (!%p2561_p0), %s239_s23, 7168, %s241_s17, [#allocation3], %s2815_s18, %s2815_s18, %s2816_s9  }
  0x1c   : > { %s255_s30 = sshll.u32 %s3187_s5, 4  ;;  %s2817_s29 = smov [#allocation5]   ;;  %s256_s30 = int_to_ptr.hbm [resolvable:$true] %s255_s30 }
  0x1d   : > { %s257_s16 = sshll.u32 %s2817_s29, 4  ;;  %s2818_s21 = smov 128   ;;  %s258_s16 = int_to_ptr.vmem [resolvable:$true] %s257_s16 }
  0x1e   : > { %s2819_s13 = smov 8   ;;  %288 = sbr.rel (%p2930_p10) target bundleno = 598 (0x256), region = 48 }
  0x1f   : > { %2566 = dma.hbm_to_vmem [thread:$0]  (!%p2561_p0), %s256_s30, 8192, %s258_s16, [#allocation6], %s2818_s21, %s2818_s21, %s2819_s13  }
  0x23   : > { %2771 = dma.done.wait (%p2934_p12), [#allocation3], 7168  }
  0x24   : > { %2773 = vsyncadd (%p2934_p12), [#allocation3], 4294960128 }
  0x25   : > { %2775 = dma.done.wait (%p2934_p12), [#allocation6], 8192  }
  0x26   : > { %2777 = vsyncadd (%p2934_p12), [#allocation6], 4294959104  ;;  %v2428_v0 = vld [vmem:[%s3183_s1 + $0x38] sm:$0xff]  ;;  %v2427_v1 = vld [vmem:[%s3183_s1 + $0x30] sm:$0xff]  ;;  %p330_p1 = scmp.lt.s32.totalorder %s2796_s27, 1  ;;  %p332_p2 = scmp.lt.s32.totalorder %s2800_s28, 1  ;;  %v455_v40 = vlaneseq }
  0x27   : > { %424 = vmatpush.bf16.msra.mxu0 %v2428_v0  ;;  %v2426_v2 = vld [vmem:[%s3183_s1 + $0x28] sm:$0xff]  ;;  %v2425_v3 = vld [vmem:[%s3183_s1 + $0x20] sm:$0xff]  ;;  %v2424_v4 = vld [vmem:[%s3183_s1 + $0x18] sm:$0xff]  ;;  %s1929_s17 = sshll.u32 %s2800_s28, 4  ;;  %vm523_vm12 = vcmask 1046528   ;;  %s2549_s19 = sshll.u32 %s2800_s28, 2 }
  0x28   : > { %s331_s23 = scalar_select %p330_p1, %s2796_s27, 1  ;;  %v2436_v5 = vld [vmem:[#allocation2 + $0x38] sm:$0xff]  ;;  %v2423_v6 = vld [vmem:[%s3183_s1 + $0x10] sm:$0xff]  ;;  %v2422_v8 = vld [vmem:[%s3183_s1 + $0x8] sm:$0xff]  ;;  %v2995_v45 = vshrl.u32 %v455_v40, 7 }
  0x29   : > { %s333_s14 = scalar_select %p332_p2, %s2800_s28, 1  ;;  %1021 = vmatpush.bf16.msra.mxu1 %v2436_v5  ;;  %v2435_v7 = vld [vmem:[#allocation2 + $0x30] sm:$0xff]  ;;  %v2434_v9 = vld [vmem:[#allocation2 + $0x28] sm:$0xff]  ;;  %v2421_v10 = vld [vmem:[%s3183_s1] sm:$0xff]  ;;  %vm505_vm13 = vsmask.f32 7424 }
  0x2a   : > { %s1887_s21 = sshll.u32 %s331_s23, 3  ;;  %v2452_v15 = vld [vmem:[#allocation2 + $0xb8] sm:$0xff]  ;;  %v2433_v16 = vld [vmem:[#allocation2 + $0x20] sm:$0xff]  ;;  %v2451_v18 = vld [vmem:[#allocation2 + $0xb0] sm:$0xff]  ;;  %s1930_s18 = sadd.s32 4294967291, %s1929_s17  ;;  %v3007_v54 = vadd.s32 8, %v2995_v45 }
  0x2b   : > { %425 = vmatpush.bf16.msra.mxu0 %v2427_v1  ;;  %s1886_s9 = sshll.u32 %s333_s14, 2  ;;  %1057 = vmatpush.bf16.msra.mxu3 %v2452_v15  ;;  %v2444_v17 = vld [vmem:[#allocation2 + $0x78] sm:$0xff]  ;;  %v2443_v21 = vld [vmem:[#allocation2 + $0x70] sm:$0xff]  ;;  %v2450_v22 = vld [vmem:[#allocation2 + $0xa8] sm:$0xff]  ;;  %v3002_v48 = vstv %s1930_s18  ;;  %s2415_s20 = sshll.u32 %s2796_s27, 3 }
  0x2c   : > { %s336_s11 = sadd.s32 %s1887_s21, %s1886_s9  ;;  %1039 = vmatpush.bf16.msra.mxu2 %v2444_v17  ;;  %v2460_v19 = vld [vmem:[#allocation2 + $0xf8] sm:$0xff]  ;;  %v2459_v23 = vld [vmem:[#allocation2 + $0xf0] sm:$0xff]  ;;  %v2442_v25 = vld [vmem:[#allocation2 + $0x68] sm:$0xff]  ;;  %v463_v53 = vadd.s32 %v3002_v48, %v2995_v45  ;;  %v464_v59 = vadd.s32 %v3002_v48, %v3007_v54  ;;  %s1763_s23 = sadd.s32 %s2549_s19, %s2415_s20 }
  0x2d   : > { %s1888_s16 = sshll.u32 %s336_s11, 2  ;;  %1022 = vmatpush.bf16.msra.mxu1 %v2435_v7  ;;  %v2432_v20 = vld [vmem:[#allocation2 + $0x18] sm:$0xff]  ;;  %v2431_v24 = vld [vmem:[#allocation2 + $0x10] sm:$0xff]  ;;  %v2449_v26 = vld [vmem:[#allocation2 + $0xa0] sm:$0xff]  ;;  %s2155_s11 = sadd.s32 4294967294, %s1929_s17 }
  0x2e   : > { %s338_s14 = scalar_lea.vmem %s3182_s0, %s1888_s16  ;;  %v2458_v27 = vld [vmem:[#allocation2 + $0xe8] sm:$0xff]  ;;  %v2441_v29 = vld [vmem:[#allocation2 + $0x60] sm:$0xff]  ;;  %v2448_v30 = vld [vmem:[#allocation2 + $0x98] sm:$0xff]  ;;  %vm467_vm1 = vcmp.ge.s32.totalorder %v463_v53, 0  ;;  %vm471_vm2 = vcmp.lt.s32.totalorder %v463_v53, 32  ;;  %vm468_vm4 = vcmp.ge.s32.totalorder %v464_v59, 0 }
  0x2f   : > { %426 = vmatpush.bf16.msra.mxu0 %v2426_v2  ;;  %v2419_v11 = vld [vmem:[%s338_s14] sm:$0xff]  ;;  %v1895_v12 = vld [vmem:[%s338_s14 + $0x8] sm:$0xf]  ;;  %v2420_v13 = vld [vmem:[%s338_s14 + $0x8] sm:$0x10]  ;;  %1058 = vmatpush.bf16.msra.mxu3 %v2451_v18  ;;  %vm472_vm5 = vcmp.lt.s32.totalorder %v464_v59, 32 }
  0x30   : > { %v1896_v14 = vor.u32 %v2420_v13, %v1895_v12  ;;  %1040 = vmatpush.bf16.msra.mxu2 %v2443_v21  ;;  %v2430_v28 = vld [vmem:[#allocation2 + $0x8] sm:$0xff]  ;;  %v2457_v31 = vld [vmem:[#allocation2 + $0xe0] sm:$0xff]  ;;  %v2440_v33 = vld [vmem:[#allocation2 + $0x58] sm:$0xff]  ;;  %s327_s16 = sand.u32 1, %s2788_s25   ;;  %s2416_s14 = sshll.u32 %s1763_s23, 2 }
  0x31   : > { %1023 = vmatpush.bf16.msra.mxu1 %v2434_v9  ;;  %v2429_v32 = vld [vmem:[#allocation2] sm:$0xff]  ;;  %v2447_v34 = vld [vmem:[#allocation2 + $0x90] sm:$0xff]  ;;  %v2456_v35 = vld [vmem:[#allocation2 + $0xd8] sm:$0xff]  ;;  %s1885_s22 = sshll.u32 %s327_s16, 4  ;;  %s1765_s18 = scalar_lea.hbm %s3189_s7, %s2416_s14 }
  0x32   : > { %v2468_v36 = vld [vmem:[#allocation2 + $0x138] sm:$0xff]  ;;  %v2439_v37 = vld [vmem:[#allocation2 + $0x50] sm:$0xff]  ;;  %v2446_v38 = vld [vmem:[#allocation2 + $0x88] sm:$0xff]  ;;  %s329_s27 = scalar_lea.vmem [#allocation7], %s1885_s22  ;;  %s1768_s21 = sshll.u32 %s1765_s18, 4  ;;  %s1769_s21 = int_to_ptr.hbm [resolvable:$true] %s1768_s21 }
  0x33   : > { %427 = vmatpush.bf16.msra.mxu0 %v2425_v3  ;;  %1059 = vmatpush.bf16.msra.mxu3 %v2450_v22  ;;  %v2455_v39 = vld [vmem:[#allocation2 + $0xd0] sm:$0xff]  ;;  %v2438_v42 = vld [vmem:[#allocation2 + $0x48] sm:$0xff]  ;;  %v2445_v43 = vld [vmem:[#allocation2 + $0x80] sm:$0xff]  ;;  %s1766_s9 = sshll.u32 %s329_s27, 4  ;;  %s1751_s13 = scalar_lea.sflag [#allocation4], %s327_s16  ;;  %s1767_s9 = int_to_ptr.vmem [resolvable:$true] %s1766_s9 }
  0x34   : > { %1041 = vmatpush.bf16.msra.mxu2 %v2442_v25  ;;  %v2467_v41 = vld [vmem:[#allocation2 + $0x130] sm:$0xff]  ;;  %v2454_v44 = vld [vmem:[#allocation2 + $0xc8] sm:$0xff]  ;;  %v3000_v47 = vld [vmem:[%s3184_s2] ss:$0 sm:$0xff]  ;;  %s2724_s29 = sshra.s32 %s1769_s21, 4  ;;  %s2730_s19 = scalar_lea.hbm %s3189_s7, 64  ;;  %s2725_s29 = int_to_ptr.hbm [resolvable:$true] %s2724_s29 }
  0x35   : > { %1024 = vmatpush.bf16.msra.mxu1 %v2433_v16  ;;  %v2466_v46 = vld [vmem:[#allocation2 + $0x128] sm:$0xff]  ;;  %v2437_v49 = vld [vmem:[#allocation2 + $0x40] sm:$0xff]  ;;  %v2484_v51 = vld [vmem:[#allocation2 + $0x1b8] sm:$0xff]  ;;  %p2731_p7 = scmp.lt.s32.totalorder %s2725_s29, %s3189_s7 }
  0x36   : > { %v2453_v50 = vld [vmem:[#allocation2 + $0xc0] sm:$0xff]  ;;  %v2476_v57 = vld [vmem:[#allocation2 + $0x178] sm:$0xff]  ;;  %v2483_v60 = vld [vmem:[#allocation2 + $0x1b0] sm:$0xff] }
  0x37   : > { %428 = vmatpush.bf16.msra.mxu0 %v2424_v4  ;;  %1060 = vmatpush.bf16.msra.mxu3 %v2449_v26  ;;  %v2465_v55 = vld [vmem:[#allocation2 + $0x120] sm:$0xff]  ;;  %v2464_v61 = vld [vmem:[#allocation2 + $0x118] sm:$0xff]  ;;  %v2475_v62 = vld [vmem:[#allocation2 + $0x170] sm:$0xff]  ;;  %v3013_v4 = vadd.s32 16, %v2995_v45 }
  0x38   : > { %1042 = vmatpush.bf16.msra.mxu2 %v2441_v29  ;;  %v2482_v63 = vld [vmem:[#allocation2 + $0x1a8] sm:$0xff]  ;;  %vm475_vm3 = vmand %vm467_vm1, %vm471_vm2  ;;  %v2463_v1 = vld [vmem:[#allocation2 + $0x110] sm:$0xff]  ;;  %vm529_vm1 = vsmask.f32 6400 }
  0x39   : > { %1025 = vmatpush.bf16.msra.mxu1 %v2432_v20  ;;  %v2474_v2 = vld [vmem:[#allocation2 + $0x168] sm:$0xff]  ;;  %v2481_v7 = vld [vmem:[#allocation2 + $0x1a0] sm:$0xff]  ;;  %vm476_vm7 = vmand %vm468_vm4, %vm472_vm5  ;;  %vm563_vm4 = vcmask 1044480   ;;  %vm548_vm5 = vsmask.f32 5376 }
  0x3a   : > { %v2462_v9 = vld [vmem:[#allocation2 + $0x108] sm:$0xff]  ;;  %v2480_v17 = vld [vmem:[#allocation2 + $0x198] sm:$0xff]  ;;  %v2461_v21 = vld [vmem:[#allocation2 + $0x100] sm:$0xff] }
  0x3b   : > { %429 = vmatpush.bf16.msra.mxu0 %v2423_v6  ;;  %1061 = vmatpush.bf16.msra.mxu3 %v2448_v30  ;;  %v2472_v22 = vld [vmem:[#allocation2 + $0x158] sm:$0xff]  ;;  %v2479_v25 = vld [vmem:[#allocation2 + $0x190] sm:$0xff]  ;;  %v2478_v30 = vld [vmem:[#allocation2 + $0x188] sm:$0xff] }
  0x3c   : > { %1043 = vmatpush.bf16.msra.mxu2 %v2440_v33  ;;  %v459_v33 = vadd.s32 24, %v2995_v45 }
  0x3d   : > { %1026 = vmatpush.bf16.msra.mxu1 %v2431_v24 }
  0x3f   : > { %430 = vmatpush.bf16.msra.mxu0 %v2422_v8  ;;  %1062 = vmatpush.bf16.msra.mxu3 %v2447_v34  ;;  %v2470_v34 = vld [vmem:[#allocation2 + $0x148] sm:$0xff] }
  0x40   : > { %1044 = vmatpush.bf16.msra.mxu2 %v2439_v37 }
  0x41   : > { %1027 = vmatpush.bf16.msra.mxu1 %v2430_v28 }
  0x43   : > { %431 = vmatpush.bf16.msra.mxu0 %v2421_v10  ;;  %1063 = vmatpush.bf16.msra.mxu3 %v2446_v38  ;;  %v2473_v10 = vld [vmem:[#allocation2 + $0x160] sm:$0xff] }
  0x44   : > { %1045 = vmatpush.bf16.msra.mxu2 %v2438_v42  ;;  %v2477_v38 = vld [vmem:[#allocation2 + $0x180] sm:$0xff] }
  0x45   : > { %1028 = vmatpush.bf16.msra.mxu1 %v2429_v32  ;;  %v2469_v42 = vld [vmem:[#allocation2 + $0x140] sm:$0xff] }
  0x46   : > { %432 = vmatmul.bf16.vlgmr.msra.gmra.mxu0 %v2419_v11  ;;  %v465_v11 = vadd.s32 %v3002_v48, %v3013_v4 }
  0x47   : > { %1075 = vmatpush.bf16.msrb.mxu0 %v2460_v19  ;;  %1064 = vmatpush.bf16.msra.mxu3 %v2445_v43 }
  0x48   : > { %1046 = vmatpush.bf16.msra.mxu2 %v2437_v49  ;;  %vm469_vm8 = vcmp.ge.s32.totalorder %v465_v11, 0  ;;  %vm473_vm9 = vcmp.lt.s32.totalorder %v465_v11, 32 }
  0x49   : > { %1093 = vmatpush.bf16.msrb.mxu1 %v2468_v36  ;;  %vm477_vm11 = vmand %vm469_vm8, %vm473_vm9 }
  0x4b   : > { %1076 = vmatpush.bf16.msrb.mxu0 %v2459_v23  ;;  %1129 = vmatpush.bf16.msrb.mxu3 %v2484_v51 }
  0x4c   : > { %1111 = vmatpush.bf16.msrb.mxu2 %v2476_v57 }
  0x4d   : > { %1094 = vmatpush.bf16.msrb.mxu1 %v2467_v41  ;;  %v466_v41 = vadd.s32 %v3002_v48, %v459_v33  ;;  %v2278_v33 = vld [vmem:[#allocation5 + $0xf0] sm:$0xf] }
  0x4f   : > { %1077 = vmatpush.bf16.msrb.mxu0 %v2458_v27  ;;  %1130 = vmatpush.bf16.msrb.mxu3 %v2483_v60  ;;  %v2471_v27 = vld [vmem:[#allocation2 + $0x150] sm:$0xff]  ;;  %vm470_vm15 = vcmp.ge.s32.totalorder %v466_v41, 0 }
  0x50   : > { %1112 = vmatpush.bf16.msrb.mxu2 %v2475_v62 }
  0x51   : > { %1095 = vmatpush.bf16.msrb.mxu1 %v2466_v46 }
  0x53   : > { %1078 = vmatpush.bf16.msrb.mxu0 %v2457_v31  ;;  %1131 = vmatpush.bf16.msrb.mxu3 %v2482_v63 }
  0x54   : > { %1113 = vmatpush.bf16.msrb.mxu2 %v2474_v2 }
  0x55   : > { %1096 = vmatpush.bf16.msrb.mxu1 %v2465_v55 }
  0x56   : > { %437 = vmatmul.bf16.gmra.mxu0 %v1896_v14 }
  0x57   : > { %1079 = vmatpush.bf16.msrb.mxu0 %v2456_v35  ;;  %1132 = vmatpush.bf16.msrb.mxu3 %v2481_v7 }
  0x58   : > { %1114 = vmatpush.bf16.msrb.mxu2 %v2473_v10 }
  0x59   : > { %1097 = vmatpush.bf16.msrb.mxu1 %v2464_v61 }
  0x5b   : > { %1080 = vmatpush.bf16.msrb.mxu0 %v2455_v39  ;;  %1133 = vmatpush.bf16.msrb.mxu3 %v2480_v17 }
  0x5c   : > { %1115 = vmatpush.bf16.msrb.mxu2 %v2472_v22 }
  0x5d   : > { %1098 = vmatpush.bf16.msrb.mxu1 %v2463_v1 }
  0x5f   : > { %1081 = vmatpush.bf16.msrb.mxu0 %v2454_v44  ;;  %1134 = vmatpush.bf16.msrb.mxu3 %v2479_v25  ;;  %v2342_v25 = vld [vmem:[#allocation5 + $0x170] sm:$0xf] }
  0x60   : > { %1116 = vmatpush.bf16.msrb.mxu2 %v2471_v27  ;;  %v2206_v27 = vld [vmem:[#allocation5 + $0x60] sm:$0xf] }
  0x61   : > { %1099 = vmatpush.bf16.msrb.mxu1 %v2462_v9 }
  0x63   : > { %1082 = vmatpush.bf16.msrb.mxu0 %v2453_v50  ;;  %1135 = vmatpush.bf16.msrb.mxu3 %v2478_v30 }
  0x64   : > { %1117 = vmatpush.bf16.msrb.mxu2 %v2470_v34  ;;  %v2516_v34 = vld [vmem:[#allocation5 + $0xf4] sm:$0xf0] }
  0x65   : > { %1100 = vmatpush.bf16.msrb.mxu1 %v2461_v21  ;;  %v2500_v21 = vld [vmem:[#allocation5 + $0x74] sm:$0xf0] }
  0x67   : > { %1136 = vmatpush.bf16.msrb.mxu3 %v2477_v38  ;;  %v2198_v38 = vld [vmem:[#allocation5 + $0x50] sm:$0xf] }
  0x68   : > { %1118 = vmatpush.bf16.msrb.mxu2 %v2469_v42 }
  0xc3   : > { %v433_v52 = vpop.f32.mrf.mxu0 }
  0xc4   : > { %v434_v56 = vadd.f32 %v3000_v47, %v433_v52 }
  0xc6   : > { %v447_v58 = vmul.f32 0.2, %v434_v56  ;;  %vm443_vm0 = vcmp.gt.f32.partialorder %v434_v56, 0.0 }
  0xc8   : > { %v451_v0 = vsel %vm443_vm0, %v434_v56, %v447_v58  ;;  %vm474_vm0 = vcmp.lt.s32.totalorder %v466_v41, 32 }
  0xc9   : > { %v487_v6 = vsel %vm475_vm3, %v451_v0, 0.0  ;;  %vm478_vm2 = vmand %vm470_vm15, %vm474_vm0  ;;  %vm539_vm3 = vcmask 1045504  }
  0xca   : > { %v491_v12 = vpack.c.bf16 %v487_v6, %v487_v6 }
  0xcb   : > { %v435_v3 = vpop.f32.mrf.mxu0 }
  0xcc   : > { %v436_v5 = vadd.f32 %v3000_v47, %v435_v3  ;;  %v498_v18 = vunpack.c.l.b16 %v491_v12 }
  0xce   : > { %vm444_vm6 = vcmp.gt.f32.partialorder %v436_v5, 0.0  ;;  %v448_v8 = vmul.f32 0.2, %v436_v5 }
  0xd0   : > { %v452_v13 = vsel %vm444_vm6, %v436_v5, %v448_v8 }
  0xd1   : > { %v488_v14 = vsel %vm476_vm7, %v452_v13, 0.0 }
  0xd2   : > { %v492_v15 = vpack.c.bf16 %v488_v14, %v488_v14 }
  0xd3   : > { %v438_v16 = vpop.f32.mrf.mxu0 }
  0xd4   : > { %v499_v19 = vunpack.c.l.b16 %v492_v15  ;;  %v439_v20 = vadd.f32 %v3000_v47, %v438_v16 }
  0xd6   : > { %v3019_v23 = vpack.c.b16 %v499_v19, %v498_v18  ;;  %vm445_vm10 = vcmp.gt.f32.partialorder %v439_v20, 0.0  ;;  %v449_v24 = vmul.f32 0.2, %v439_v20 }
  0xd8   : > { %v453_v26 = vsel %vm445_vm10, %v439_v20, %v449_v24  ;;  %1029 = vmatmul.bf16.vlgmr.msra.gmra.mxu1 %v3019_v23  ;;  %v3023_v29 = vshll.u32 %v3019_v23, 16  ;;  %v3027_v36 = vshrl.u32 %v3019_v23, 16  ;;  %v524_v43 = vrot.slane %v3019_v23, 1  ;;  %v2214_v20 = vld [vmem:[#allocation5 + $0x70] sm:$0xf] }
  0xd9   : > { %v489_v28 = vsel %vm477_vm11, %v453_v26, 0.0  ;;  %v540_v5 = vrot.slane %v3019_v23, 2  ;;  %v564_v14 = vrot.slane %v3019_v23, 3  ;;  %v2215_v24 = vor.u32 %v2500_v21, %v2214_v20  ;;  %v2532_v23 = vld [vmem:[#allocation5 + $0x174] sm:$0xf0] }
  0xda   : > { %v493_v31 = vpack.c.bf16 %v489_v28, %v489_v28  ;;  %v511_v37 = vrot.slane %v3023_v29, 1  ;;  %v530_v51 = vrot.slane %v3027_v36, 1  ;;  %v549_v12 = vrot.slane %v3027_v36, 2  ;;  %v2498_v28 = vld [vmem:[#allocation5 + $0x64] sm:$0xf0] }
  0xdb   : > { %v440_v32 = vpop.f32.mrf.mxu0  ;;  %v550_v13 = vrot.slane %v3023_v29, 3  ;;  %1622 = vmatpush.bf16.msra.mxu0 %v2215_v24  ;;  %v2343_v26 = vor.u32 %v2532_v23, %v2342_v25  ;;  %v2207_v30 = vor.u32 %v2498_v28, %v2206_v27  ;;  %v2310_v20 = vld [vmem:[#allocation5 + $0x130] sm:$0xf]  ;;  %v2524_v21 = vld [vmem:[#allocation5 + $0x134] sm:$0xf0] }
  0xdc   : > { %v500_v35 = vunpack.c.l.b16 %v493_v31  ;;  %v441_v40 = vadd.f32 %v3000_v47, %v440_v32  ;;  %v512_v50 = vor.u32 %v511_v37, %v3027_v36  ;;  %v531_v47 = vrot.slane %v3023_v29, 2  ;;  %v2406_v29 = vld [vmem:[#allocation5 + $0x1f0] sm:$0xf]  ;;  %v2548_v31 = vld [vmem:[#allocation5 + $0x1f4] sm:$0xf0] }
  0xdd   : > { %v551_v17 = vor.u32 %v550_v13, %v549_v12  ;;  %v2407_v32 = vor.u32 %v2548_v31, %v2406_v29  ;;  %v2279_v36 = vor.u32 %v2516_v34, %v2278_v33  ;;  %v2530_v37 = vld [vmem:[#allocation5 + $0x164] sm:$0xf0]  ;;  %v2311_v24 = vor.u32 %v2524_v21, %v2310_v20  ;;  %v2174_v25 = vld [vmem:[#allocation5 + $0x20] sm:$0xf]  ;;  %v2540_v28 = vld [vmem:[#allocation5 + $0x1b4] sm:$0xf0] }
  0xde   : > { %v3030_v39 = vpack.c.b16 %v500_v35, %v500_v35  ;;  %v450_v48 = vmul.f32 0.2, %v441_v40  ;;  %vm446_vm14 = vcmp.gt.f32.partialorder %v441_v40, 0.0  ;;  %v532_v58 = vor.u32 %v531_v47, %v530_v51  ;;  %v2270_v51 = vld [vmem:[#allocation5 + $0xe0] sm:$0xf] }
  0xdf   : > { %1623 = vmatpush.bf16.msra.mxu0 %v2207_v30  ;;  %1636 = vmatpush.bf16.msra.mxu1 %v2279_v36  ;;  %v2514_v47 = vld [vmem:[#allocation5 + $0xe4] sm:$0xf0]  ;;  %v2246_v30 = vld [vmem:[#allocation5 + $0xb0] sm:$0xf]  ;;  %v2508_v31 = vld [vmem:[#allocation5 + $0xb4] sm:$0xf0] }
  0xe0   : > { %v525_v44 = vrot.slane %v3030_v39, 1  ;;  %v514_v46 = vshll.u32 %v3030_v39, 16  ;;  %v518_v49 = vshrl.u32 %v3030_v39, 16  ;;  %v454_v60 = vsel %vm446_vm14, %v441_v40, %v450_v48  ;;  %v2326_v48 = vld [vmem:[#allocation5 + $0x150] sm:$0xf] }
  0xe1   : > { %v490_v62 = vsel %vm478_vm2, %v454_v60, 0.0  ;;  %v541_v2 = vrot.slane %v3030_v39, 2  ;;  %v2390_v60 = vld [vmem:[#allocation5 + $0x1d0] sm:$0xf]  ;;  %v2542_v12 = vld [vmem:[#allocation5 + $0x1c4] sm:$0xf0]  ;;  %v2247_v33 = vor.u32 %v2508_v31, %v2246_v30 }
  0xe2   : > { %v526_v52 = vsel %vm523_vm12, %v524_v43, %v525_v44  ;;  %v516_v53 = vrot.slane %v514_v46, 1  ;;  %v533_v55 = vrot.slane %v518_v49, 1  ;;  %v534_v56 = vrot.slane %v514_v46, 2  ;;  %v2546_v46 = vld [vmem:[#allocation5 + $0x1e4] sm:$0xf0] }
  0xe3   : > { %1065 = vmatmul.bf16.vlgmr.msra.gmra.mxu3 %v526_v52  ;;  %v494_v63 = vpack.c.bf16 %v490_v62, %v490_v62  ;;  %v542_v6 = vsel %vm539_vm3, %v540_v5, %v541_v2  ;;  %v2182_v5 = vld [vmem:[#allocation5 + $0x30] sm:$0xf]  ;;  %v2490_v23 = vld [vmem:[#allocation5 + $0x24] sm:$0xf0]  ;;  %v2488_v36 = vld [vmem:[#allocation5 + $0x14] sm:$0xf0] }
  0xe4   : > { %v517_v57 = vsel %vm505_vm13, %v512_v50, %v516_v53  ;;  %v535_v59 = vor.u32 %v534_v56, %v533_v55  ;;  %v520_v1 = vor.u32 %v518_v49, %v516_v53  ;;  %1664 = vmatpush.bf16.msra.mxu3 %v2407_v32  ;;  %v2271_v53 = vor.u32 %v2514_v47, %v2270_v51  ;;  %v2528_v55 = vld [vmem:[#allocation5 + $0x154] sm:$0xf0]  ;;  %v2190_v56 = vld [vmem:[#allocation5 + $0x40] sm:$0xf]  ;;  %v2522_v34 = vld [vmem:[#allocation5 + $0x124] sm:$0xf0] }
  0xe5   : > { %1047 = vmatmul.bf16.vlgmr.msra.gmra.mxu2 %v517_v57  ;;  %v546_v0 = vunpack.c.l.b16 %v494_v63  ;;  %v2494_v57 = vld [vmem:[#allocation5 + $0x44] sm:$0xf0]  ;;  %v2262_v63 = vld [vmem:[#allocation5 + $0xd0] sm:$0xf]  ;;  %v2175_v27 = vor.u32 %v2490_v23, %v2174_v25  ;;  %v2302_v32 = vld [vmem:[#allocation5 + $0x120] sm:$0xf] }
  0xe6   : > { %v536_v61 = vsel %vm529_vm1, %v532_v58, %v535_v59  ;;  %1650 = vmatpush.bf16.msra.mxu2 %v2343_v26  ;;  %v2327_v58 = vor.u32 %v2528_v55, %v2326_v48  ;;  %1637 = vmatpush.bf16.msra.mxu1 %v2271_v53  ;;  %v2374_v26 = vld [vmem:[#allocation5 + $0x1b0] sm:$0xf]  ;;  %v3075_v51 = vld [vmem:[%s3186_s4] ss:$0 sm:$0xff]  ;;  %v2506_v48 = vld [vmem:[#allocation5 + $0xa4] sm:$0xf0] }
  0xe7   : > { %1083 = vmatmul.bf16.vlgmr.msrb.gmra.mxu0 %v536_v61  ;;  %v547_v3 = vpack.c.b16 %v546_v0, %v500_v35  ;;  %v2334_v35 = vld [vmem:[#allocation5 + $0x160] sm:$0xf]  ;;  %v2544_v61 = vld [vmem:[#allocation5 + $0x1d4] sm:$0xf0]  ;;  %v2375_v29 = vor.u32 %v2540_v28, %v2374_v26  ;;  %v2534_v21 = vld [vmem:[#allocation5 + $0x184] sm:$0xf0] }
  0xe8   : > { %1034 = vmatmul.bf16.gmra.mxu1 %v3030_v39  ;;  %v2496_v39 = vld [vmem:[#allocation5 + $0x54] sm:$0xf0]  ;;  %v2335_v42 = vor.u32 %v2530_v37, %v2334_v35  ;;  %v2391_v62 = vor.u32 %v2544_v61, %v2390_v60  ;;  %v2166_v35 = vld [vmem:[#allocation5 + $0x10] sm:$0xf]  ;;  %v2238_v47 = vld [vmem:[#allocation5 + $0xa0] sm:$0xf] }
  0xe9   : > { %v553_v7 = vshrl.u32 %v547_v3, 16  ;;  %v556_v8 = vshll.u32 %v547_v3, 16  ;;  %v565_v11 = vrot.slane %v547_v3, 3  ;;  %v2199_v43 = vor.u32 %v2496_v39, %v2198_v38  ;;  %v2512_v0 = vld [vmem:[#allocation5 + $0xd4] sm:$0xf0] }
  0xea   : > { %1651 = vmatpush.bf16.msra.mxu2 %v2335_v42  ;;  %v2526_v3 = vld [vmem:[#allocation5 + $0x144] sm:$0xf0]  ;;  %v2303_v39 = vor.u32 %v2522_v34, %v2302_v32  ;;  %v2167_v42 = vor.u32 %v2488_v36, %v2166_v35  ;;  %v2239_v55 = vor.u32 %v2506_v48, %v2238_v47  ;;  %v2358_v61 = vld [vmem:[#allocation5 + $0x190] sm:$0xf]  ;;  %v2547_v28 = vld [vmem:[#allocation5 + $0x1f4] sm:$0xf] }
  0xeb   : > { %v555_v9 = vrot.slane %v553_v7, 2  ;;  %v558_v10 = vrot.slane %v556_v8, 3  ;;  %v566_v16 = vsel %vm563_vm4, %v564_v14, %v565_v11  ;;  %1624 = vmatpush.bf16.msra.mxu0 %v2199_v43  ;;  %v2366_v43 = vld [vmem:[#allocation5 + $0x1a0] sm:$0xf]  ;;  %v2486_v60 = vld [vmem:[#allocation5 + $0x4] sm:$0xf0] }
  0xec   : > { %v2222_v31 = vld [vmem:[#allocation5 + $0x80] sm:$0xf]  ;;  %v2502_v32 = vld [vmem:[#allocation5 + $0x84] sm:$0xf0]  ;;  %v2515_v35 = vld [vmem:[#allocation5 + $0xf4] sm:$0xf] }
  0xed   : > { %v559_v15 = vor.u32 %v558_v10, %v555_v9  ;;  %v2223_v34 = vor.u32 %v2502_v32, %v2222_v31  ;;  %v2280_v36 = vld [vmem:[#allocation5 + $0xf8] sm:$0xf0]  ;;  %v2256_v31 = vld [vmem:[#allocation5 + $0xc8] sm:$0xf0]  ;;  %v2523_v32 = vld [vmem:[#allocation5 + $0x134] sm:$0xf] }
  0xee   : > { %1652 = vmatpush.bf16.msra.mxu2 %v2327_v58  ;;  %v2200_v48 = vld [vmem:[#allocation5 + $0x58] sm:$0xf0]  ;;  %vm1206_vm2 = vcmask 1040384   ;;  %vm1210_vm4 = vsmask.f32 1280 }
  0xef   : > { %v560_v18 = vsel %vm548_vm5, %v551_v17, %v559_v15  ;;  %vm1190_vm5 = vsmask.f32 256 }
  0xf3   : > { %1070 = vmatmul.bf16.gmra.mxu3 %v525_v44  ;;  %v2398_v44 = vld [vmem:[#allocation5 + $0x1e0] sm:$0xf] }
  0xf4   : > { %v2399_v50 = vor.u32 %v2546_v46, %v2398_v44  ;;  %v2538_v44 = vld [vmem:[#allocation5 + $0x1a4] sm:$0xf0] }
  0xf5   : > { %1052 = vmatmul.bf16.gmra.mxu2 %v520_v1  ;;  %v2318_v1 = vld [vmem:[#allocation5 + $0x140] sm:$0xf] }
  0xf6   : > { %1665 = vmatpush.bf16.msra.mxu3 %v2399_v50  ;;  %v2319_v9 = vor.u32 %v2526_v3, %v2318_v1  ;;  %v2367_v50 = vor.u32 %v2538_v44, %v2366_v43  ;;  %v2216_v1 = vld [vmem:[#allocation5 + $0x78] sm:$0xf0]  ;;  %v2529_v43 = vld [vmem:[#allocation5 + $0x164] sm:$0xf]  ;;  %v2336_v44 = vld [vmem:[#allocation5 + $0x168] sm:$0xf0] }
  0xf7   : > { %1088 = vmatmul.bf16.gmra.mxu0 %v535_v59  ;;  %v2191_v59 = vor.u32 %v2494_v57, %v2190_v56  ;;  %v2294_v56 = vld [vmem:[#allocation5 + $0x110] sm:$0xf]  ;;  %v2520_v57 = vld [vmem:[#allocation5 + $0x114] sm:$0xf0]  ;;  %v2339_v47 = vor.u32 %v2529_v43, %v2336_v44  ;;  %v2489_v43 = vld [vmem:[#allocation5 + $0x24] sm:$0xf] }
  0xf8   : > { %1101 = vmatmul.bf16.vlgmr.msrb.gmra.mxu1 %v542_v6  ;;  %v2492_v6 = vld [vmem:[#allocation5 + $0x34] sm:$0xf0]  ;;  %1653 = vmatpush.bf16.msra.mxu2 %v2319_v9  ;;  %v2295_v58 = vor.u32 %v2520_v57, %v2294_v56  ;;  %v2286_v9 = vld [vmem:[#allocation5 + $0x100] sm:$0xf]  ;;  %v2400_v56 = vld [vmem:[#allocation5 + $0x1e8] sm:$0xf0] }
  0xf9   : > { %1625 = vmatpush.bf16.msra.mxu0 %v2191_v59  ;;  %v2183_v10 = vor.u32 %v2492_v6, %v2182_v5  ;;  %v2158_v59 = vld [vmem:[#allocation5] sm:$0xf]  ;;  %v2230_v6 = vld [vmem:[#allocation5 + $0x90] sm:$0xf]  ;;  %v2176_v44 = vld [vmem:[#allocation5 + $0x28] sm:$0xf0] }
  0xfa   : > { %1666 = vmatpush.bf16.msra.mxu3 %v2391_v62  ;;  %v2159_v62 = vor.u32 %v2486_v60, %v2158_v59  ;;  %v2513_v60 = vld [vmem:[#allocation5 + $0xe4] sm:$0xf] }
  0xfc   : > { %1654 = vmatpush.bf16.msra.mxu2 %v2311_v24  ;;  %v2497_v24 = vld [vmem:[#allocation5 + $0x64] sm:$0xf] }
  0xfd   : > { %1626 = vmatpush.bf16.msra.mxu0 %v2183_v10 }
 0x100   : > { %1655 = vmatpush.bf16.msra.mxu2 %v2303_v39 }
 0x101   : > { %1627 = vmatpush.bf16.msra.mxu0 %v2175_v27  ;;  %v2208_v27 = vld [vmem:[#allocation5 + $0x68] sm:$0xf0] }
 0x102   : > { %v2211_v30 = vor.u32 %v2497_v24, %v2208_v27 }
 0x103   : > { %1137 = vmatmul.bf16.vlgmr.msrb.gmra.mxu3 %v566_v16  ;;  %v2510_v16 = vld [vmem:[#allocation5 + $0xc4] sm:$0xf0] }
 0x104   : > { %1656 = vmatpush.bf16.msra.mxu2 %v2295_v58  ;;  %v3089_v58 = vstv %s2155_s11  ;;  %s2726_s11 = scalar_lea.hbm %s2725_s29, 16 }
 0x105   : > { %1119 = vmatmul.bf16.vlgmr.msrb.gmra.mxu2 %v560_v18  ;;  %1628 = vmatpush.bf16.msra.mxu0 %v2167_v42  ;;  %v2283_v42 = vor.u32 %v2515_v35, %v2280_v36  ;;  %p2727_p4 = scmp.ne.s32.totalorder %s2725_s29, %s2726_s11  ;;  %p2732_p9 = scmp.lt.s32.totalorder %s2730_s19, %s2726_s11 }
 0x107   : > { %p2728_p5 = pnand %p2727_p4, %p2914_p3  ;;  %p2733_p10 = por %p2732_p9, %p2731_p7 }
 0x108   : > { %1106 = vmatmul.bf16.gmra.mxu1 %v541_v2  ;;  %v2263_v2 = vor.u32 %v2512_v0, %v2262_v63  ;;  %v2536_v63 = vld [vmem:[#allocation5 + $0x194] sm:$0xf0]  ;;  %v2499_v0 = vld [vmem:[#allocation5 + $0x74] sm:$0xf] }
 0x109   : > { %v2359_v3 = vor.u32 %v2536_v63, %v2358_v61  ;;  %v2219_v5 = vor.u32 %v2499_v0, %v2216_v1  ;;  %1629 = vmatpush.bf16.msra.mxu0 %v2159_v62  ;;  %v2272_v61 = vld [vmem:[#allocation5 + $0xe8] sm:$0xf0]  ;;  %v2527_v62 = vld [vmem:[#allocation5 + $0x154] sm:$0xf]  ;;  %p2729_p6 = pneg %p2728_p5 }
 0x10a   : > { %1638 = vmatpush.bf16.msra.mxu1 %v2263_v2 }
 0x10b   : > { %p2734_p11 = pnand %p2733_p10, %p2729_p6 }
 0x10d   : > { %1678 = vmatpush.bf16.msrb.mxu0 %v2219_v5  ;;  %v2493_v5 = vld [vmem:[#allocation5 + $0x44] sm:$0xf] }
 0x111   : > { %1679 = vmatpush.bf16.msrb.mxu0 %v2211_v30 }
 0x113   : > { %1142 = vmatmul.bf16.gmra.mxu3 %v565_v11  ;;  %v2382_v11 = vld [vmem:[#allocation5 + $0x1c0] sm:$0xf] }
 0x114   : > { %v2383_v14 = vor.u32 %v2542_v12, %v2382_v11  ;;  %v2518_v11 = vld [vmem:[#allocation5 + $0x104] sm:$0xf0]  ;;  %v2531_v12 = vld [vmem:[#allocation5 + $0x174] sm:$0xf] }
 0x115   : > { %1124 = vmatmul.bf16.gmra.mxu2 %v559_v15  ;;  %v2254_v15 = vld [vmem:[#allocation5 + $0xc0] sm:$0xf]  ;;  %v2287_v20 = vor.u32 %v2518_v11, %v2286_v9  ;;  %v2543_v11 = vld [vmem:[#allocation5 + $0x1d4] sm:$0xf] }
 0x116   : > { %1667 = vmatpush.bf16.msra.mxu3 %v2383_v14  ;;  %v2255_v18 = vor.u32 %v2510_v16, %v2254_v15  ;;  %v2344_v14 = vld [vmem:[#allocation5 + $0x178] sm:$0xf0] }
 0x117   : > { %v2347_v23 = vor.u32 %v2531_v12, %v2344_v14  ;;  %1657 = vmatpush.bf16.msra.mxu2 %v2287_v20  ;;  %v2392_v12 = vld [vmem:[#allocation5 + $0x1d8] sm:$0xf0]  ;;  %v2525_v20 = vld [vmem:[#allocation5 + $0x144] sm:$0xf] }
 0x118   : > { %1639 = vmatpush.bf16.msra.mxu1 %v2255_v18 }
 0x11a   : > { %1668 = vmatpush.bf16.msra.mxu3 %v2375_v29  ;;  %v2408_v29 = vld [vmem:[#allocation5 + $0x1f8] sm:$0xf0] }
 0x11b   : > { %1706 = vmatpush.bf16.msrb.mxu2 %v2347_v23  ;;  %v2491_v23 = vld [vmem:[#allocation5 + $0x34] sm:$0xf] }
 0x11c   : > { %1640 = vmatpush.bf16.msra.mxu1 %v2247_v33 }
 0x11e   : > { %1669 = vmatpush.bf16.msra.mxu3 %v2367_v50  ;;  %v2495_v50 = vld [vmem:[#allocation5 + $0x54] sm:$0xf] }
 0x11f   : > { %v2203_v59 = vor.u32 %v2495_v50, %v2200_v48  ;;  %1707 = vmatpush.bf16.msrb.mxu2 %v2339_v47  ;;  %v2539_v50 = vld [vmem:[#allocation5 + $0x1b4] sm:$0xf]  ;;  %v2179_v48 = vor.u32 %v2489_v43, %v2176_v44 }
 0x120   : > { %1641 = vmatpush.bf16.msra.mxu1 %v2239_v55  ;;  %v2545_v55 = vld [vmem:[#allocation5 + $0x1e4] sm:$0xf] }
 0x121   : > { %1680 = vmatpush.bf16.msrb.mxu0 %v2203_v59 }
 0x122   : > { %1670 = vmatpush.bf16.msra.mxu3 %v2359_v3  ;;  %v2328_v3 = vld [vmem:[#allocation5 + $0x158] sm:$0xf0] }
 0x123   : > { %v2331_v9 = vor.u32 %v2527_v62, %v2328_v3 }
 0x125   : > { %1708 = vmatpush.bf16.msrb.mxu2 %v2331_v9 }
 0x155   : > { %v3048_v19 = vpop.f32.mrf.mxu1 }
 0x156   : > { %v1031_v2 = vadd.f32 %v3075_v51, %v3048_v19  ;;  %v2350_v19 = vld [vmem:[#allocation5 + $0x180] sm:$0xf] }
 0x157   : > { %v2351_v26 = vor.u32 %v2534_v21, %v2350_v19 }
 0x159   : > { %1671 = vmatpush.bf16.msra.mxu3 %v2351_v26  ;;  %v2184_v26 = vld [vmem:[#allocation5 + $0x38] sm:$0xf0] }
 0x15a   : > { %v2187_v27 = vor.u32 %v2491_v23, %v2184_v26 }
 0x15d   : > { %v3050_v22 = vpop.f32.mrf.mxu1 }
 0x15e   : > { %v1033_v57 = vadd.f32 %v3075_v51, %v3050_v22  ;;  %v2192_v22 = vld [vmem:[#allocation5 + $0x48] sm:$0xf0] }
 0x164   : > { %v3052_v40 = vpop.f32.mrf.mxu0 }
 0x165   : > { %v3054_v41 = vpop.f32.mrf.mxu1 }
 0x166   : > { %v3056_v49 = vpop.f32.mrf.mxu3  ;;  %v1036_v19 = vadd.f32 %v3075_v51, %v3054_v41  ;;  %v2509_v51 = vld [vmem:[#allocation5 + $0xc4] sm:$0xf] }
 0x168   : > { %v3058_v52 = vpop.f32.mrf.mxu2 }
 0x169   : > { %v1049_v15 = vadd.f32 %v3058_v52, %v1031_v2  ;;  %v2411_v52 = vor.u32 %v2547_v28, %v2408_v29  ;;  %v2275_v2 = vor.u32 %v2513_v60, %v2272_v61  ;;  %v2541_v28 = vld [vmem:[#allocation5 + $0x1c4] sm:$0xf]  ;;  %v2384_v29 = vld [vmem:[#allocation5 + $0x1c8] sm:$0xf0]  ;;  %v2507_v60 = vld [vmem:[#allocation5 + $0xb4] sm:$0xf] }
 0x16a   : > { %v2387_v41 = vor.u32 %v2541_v28, %v2384_v29  ;;  %v2248_v61 = vld [vmem:[#allocation5 + $0xb8] sm:$0xf0] }
 0x16b   : > { %v1067_v39 = vadd.f32 %v3056_v49, %v1049_v15  ;;  %1720 = vmatpush.bf16.msrb.mxu3 %v2411_v52  ;;  %v2403_v49 = vor.u32 %v2545_v55, %v2400_v56  ;;  %v2511_v15 = vld [vmem:[#allocation5 + $0xd4] sm:$0xf]  ;;  %v1159_v52 = vadd.s32 %v3089_v58, %v3007_v54  ;;  %v2259_v54 = vor.u32 %v2509_v51, %v2256_v31  ;;  %v2376_v55 = vld [vmem:[#allocation5 + $0x1b8] sm:$0xf0]  ;;  %v2533_v31 = vld [vmem:[#allocation5 + $0x184] sm:$0xf] }
 0x16c   : > { %v3060_v7 = vpop.f32.mrf.mxu0 }
 0x16d   : > { %v1037_v8 = vpop.f32.mrf.mxu1  ;;  %v1085_v0 = vadd.f32 %v3052_v40, %v1067_v39  ;;  %v2395_v40 = vor.u32 %v2543_v11, %v2392_v12  ;;  %v2312_v39 = vld [vmem:[#allocation5 + $0x138] sm:$0xf0]  ;;  %vm1162_vm10 = vcmp.ge.s32.totalorder %v1159_v52, 0  ;;  %vm1165_vm11 = vcmp.lt.s32.totalorder %v1159_v52, 32  ;;  %v2240_v11 = vld [vmem:[#allocation5 + $0xa8] sm:$0xf0] }
 0x16e   : > { %v3062_v13 = vpop.f32.mrf.mxu3  ;;  %v2504_v8 = vld [vmem:[#allocation5 + $0x94] sm:$0xf0]  ;;  %v2519_v12 = vld [vmem:[#allocation5 + $0x114] sm:$0xf]  ;;  %vm1168_vm13 = vmand %vm1162_vm10, %vm1165_vm11 }
 0x16f   : > { %v2231_v10 = vor.u32 %v2504_v8, %v2230_v6  ;;  %v1158_v8 = vadd.s32 %v3089_v58, %v2995_v45  ;;  %1721 = vmatpush.bf16.msrb.mxu3 %v2403_v49  ;;  %v2379_v49 = vor.u32 %v2539_v50, %v2376_v55  ;;  %v2232_v52 = vld [vmem:[#allocation5 + $0x98] sm:$0xf0] }
 0x170   : > { %v3064_v17 = vpop.f32.mrf.mxu2 }
 0x171   : > { %1642 = vmatpush.bf16.msra.mxu1 %v2231_v10  ;;  %v1051_v63 = vadd.f32 %v3064_v17, %v1033_v57  ;;  %v2195_v10 = vor.u32 %v2493_v5, %v2192_v22  ;;  %vm1161_vm6 = vcmp.ge.s32.totalorder %v1158_v8, 0  ;;  %vm1164_vm7 = vcmp.lt.s32.totalorder %v1158_v8, 32  ;;  %v2168_v5 = vld [vmem:[#allocation5 + $0x18] sm:$0xf0]  ;;  %v2368_v22 = vld [vmem:[#allocation5 + $0x1a8] sm:$0xf0] }
 0x172   : > { %vm3107_vm9 = vmand %vm1161_vm6, %vm1164_vm7 }
 0x173   : > { %v1069_v21 = vadd.f32 %v3062_v13, %v1051_v63  ;;  %1681 = vmatpush.bf16.msrb.mxu0 %v2195_v10  ;;  %1722 = vmatpush.bf16.msrb.mxu3 %v2395_v40  ;;  %v2521_v63 = vld [vmem:[#allocation5 + $0x124] sm:$0xf] }
 0x174   : > { %v3066_v37 = vpop.f32.mrf.mxu0  ;;  %v2505_v10 = vld [vmem:[#allocation5 + $0xa4] sm:$0xf] }
 0x175   : > { %v3068_v38 = vpop.f32.mrf.mxu1  ;;  %1643 = vmatpush.bf16.msra.mxu1 %v2223_v34  ;;  %v2243_v40 = vor.u32 %v2505_v10, %v2240_v11 }
 0x176   : > { %v3070_v46 = vpop.f32.mrf.mxu3  ;;  %v1103_v17 = vadd.f32 %v3068_v38, %v1085_v0  ;;  %v2304_v0 = vld [vmem:[#allocation5 + $0x128] sm:$0xf0] }
 0x177   : > { %1682 = vmatpush.bf16.msrb.mxu0 %v2187_v27  ;;  %1723 = vmatpush.bf16.msrb.mxu3 %v2387_v41  ;;  %v2307_v3 = vor.u32 %v2521_v63, %v2304_v0 }
 0x178   : > { %v3077_v53 = vpop.f32.mrf.mxu2 }
 0x179   : > { %1692 = vmatpush.bf16.msrb.mxu1 %v2283_v42  ;;  %v1054_v13 = vadd.f32 %v3077_v53, %v1036_v19  ;;  %v2315_v53 = vor.u32 %v2523_v32, %v2312_v39  ;;  %v2352_v32 = vld [vmem:[#allocation5 + $0x188] sm:$0xf0] }
 0x17a   : > { %v2224_v39 = vld [vmem:[#allocation5 + $0x88] sm:$0xf0] }
 0x17b   : > { %v1072_v56 = vadd.f32 %v3070_v46, %v1054_v13  ;;  %1683 = vmatpush.bf16.msrb.mxu0 %v2179_v48  ;;  %1724 = vmatpush.bf16.msrb.mxu3 %v2379_v49  ;;  %v2537_v46 = vld [vmem:[#allocation5 + $0x1a4] sm:$0xf] }
 0x17c   : > { %v1091_v16 = vpop.f32.mrf.mxu0  ;;  %v2371_v9 = vor.u32 %v2537_v46, %v2368_v22 }
 0x17d   : > { %v3082_v18 = vpop.f32.mrf.mxu1  ;;  %1693 = vmatpush.bf16.msrb.mxu1 %v2275_v2  ;;  %v2264_v16 = vld [vmem:[#allocation5 + $0xd8] sm:$0xf0]  ;;  %v2487_v2 = vld [vmem:[#allocation5 + $0x14] sm:$0xf] }
 0x17e   : > { %v1073_v25 = vpop.f32.mrf.mxu3  ;;  %v2267_v24 = vor.u32 %v2511_v15, %v2264_v16  ;;  %v2171_v8 = vor.u32 %v2487_v2, %v2168_v5  ;;  %v2485_v15 = vld [vmem:[#allocation5 + $0x4] sm:$0xf]  ;;  %v2160_v16 = vld [vmem:[#allocation5 + $0x8] sm:$0xf0] }
 0x17f   : > { %v2320_v25 = vld [vmem:[#allocation5 + $0x148] sm:$0xf0]  ;;  %1725 = vmatpush.bf16.msrb.mxu3 %v2371_v9 }
 0x180   : > { %v1055_v33 = vpop.f32.mrf.mxu2  ;;  %v2323_v38 = vor.u32 %v2525_v20, %v2320_v25  ;;  %1684 = vmatpush.bf16.msrb.mxu0 %v2171_v8  ;;  %v1160_v25 = vadd.s32 %v3089_v58, %v3013_v4  ;;  %v2517_v4 = vld [vmem:[#allocation5 + $0x104] sm:$0xf]  ;;  %v2288_v58 = vld [vmem:[#allocation5 + $0x108] sm:$0xf0] }
 0x181   : > { %1694 = vmatpush.bf16.msrb.mxu1 %v2267_v24  ;;  %v1087_v33 = vadd.f32 %v3060_v7, %v1069_v21  ;;  %v2163_v21 = vor.u32 %v2485_v15, %v2160_v16 }
 0x182   : > { %1709 = vmatpush.bf16.msrb.mxu2 %v2323_v38  ;;  %vm1163_vm14 = vcmp.ge.s32.totalorder %v1160_v25, 0  ;;  %vm1166_vm15 = vcmp.lt.s32.totalorder %v1160_v25, 32  ;;  %v1280_v25 = vld [vmem:[%s3188_s6] sm:$0x3] }
 0x183   : > { %v1105_v7 = vadd.f32 %v3082_v18, %v1087_v33  ;;  %v2251_v18 = vor.u32 %v2507_v60, %v2248_v61  ;;  %vm1169_vm1 = vmand %vm1163_vm14, %vm1166_vm15 }
 0x184   : > { %1685 = vmatpush.bf16.msrb.mxu0 %v2163_v21 }
 0x185   : > { %v3093_v1 = vpop.f32.mrf.mxu1  ;;  %1695 = vmatpush.bf16.msrb.mxu1 %v2259_v54  ;;  %v2501_v54 = vld [vmem:[#allocation5 + $0x84] sm:$0xf] }
 0x186   : > { %v1138_v6 = vpop.f32.mrf.mxu3  ;;  %1710 = vmatpush.bf16.msrb.mxu2 %v2315_v53  ;;  %v2227_v43 = vor.u32 %v2501_v54, %v2224_v39 }
 0x188   : > { %v1120_v14 = vpop.f32.mrf.mxu2 }
 0x189   : > { %v1121_v45 = vadd.f32 %v1120_v14, %v1103_v17  ;;  %1696 = vmatpush.bf16.msrb.mxu1 %v2251_v18  ;;  %v1090_v17 = vadd.f32 %v3066_v37, %v1072_v56  ;;  %v2296_v14 = vld [vmem:[#allocation5 + $0x118] sm:$0xf0] }
 0x18a   : > { %1711 = vmatpush.bf16.msrb.mxu2 %v2307_v3  ;;  %v2299_v19 = vor.u32 %v2519_v12, %v2296_v14  ;;  %v2360_v37 = vld [vmem:[#allocation5 + $0x198] sm:$0xf0] }
 0x18b   : > { %v1139_v30 = vadd.f32 %v1138_v6, %v1121_v45  ;;  %v2535_v45 = vld [vmem:[#allocation5 + $0x194] sm:$0xf]  ;;  %v1108_v23 = vadd.f32 %v3093_v1, %v1090_v17  ;;  %v2291_v1 = vor.u32 %v2517_v4, %v2288_v58 }
 0x18c   : > { %v2363_v27 = vor.u32 %v2535_v45, %v2360_v37 }
 0x18d   : > { %vm1147_vm8 = vcmp.gt.f32.partialorder %v1139_v30, 0.0  ;;  %v1150_v34 = vmul.f32 0.2, %v1139_v30  ;;  %v1109_v36 = vpop.f32.mrf.mxu1  ;;  %1697 = vmatpush.bf16.msrb.mxu1 %v2243_v40 }
 0x18e   : > { %v1140_v42 = vpop.f32.mrf.mxu3  ;;  %1712 = vmatpush.bf16.msrb.mxu2 %v2299_v19  ;;  %1726 = vmatpush.bf16.msrb.mxu3 %v2363_v27  ;;  %v2355_v36 = vor.u32 %v2533_v31, %v2352_v32 }
 0x18f   : > { %v1153_v47 = vsel %vm1147_vm8, %v1139_v30, %v1150_v34  ;;  %v2503_v30 = vld [vmem:[#allocation5 + $0x94] sm:$0xf] }
 0x190   : > { %v3115_v57 = vsel %vm3107_vm9, %v1153_v47, 0.0  ;;  %v1122_v59 = vpop.f32.mrf.mxu2  ;;  %v2235_v51 = vor.u32 %v2503_v30, %v2232_v52 }
 0x191   : > { %v1123_v62 = vadd.f32 %v1122_v59, %v1105_v7  ;;  %v1179_v26 = vpack.c.bf16 %v3115_v57, %v3115_v57 }
 0x192   : > { %1698 = vmatpush.bf16.msrb.mxu1 %v2235_v51  ;;  %1713 = vmatpush.bf16.msrb.mxu2 %v2291_v1 }
 0x193   : > { %v1141_v6 = vadd.f32 %v1140_v42, %v1123_v62  ;;  %v1185_v33 = vunpack.c.l.b16 %v1179_v26  ;;  %1727 = vmatpush.bf16.msrb.mxu3 %v2355_v36 }
 0x195   : > { %vm1148_vm12 = vcmp.gt.f32.partialorder %v1141_v6, 0.0  ;;  %v1151_v20 = vmul.f32 0.2, %v1141_v6 }
 0x196   : > { %v1143_v24 = vpop.f32.mrf.mxu3  ;;  %1699 = vmatpush.bf16.msrb.mxu1 %v2227_v43 }
 0x197   : > { %v1154_v38 = vsel %vm1148_vm12, %v1141_v6, %v1151_v20 }
 0x198   : > { %v1177_v28 = vsel %vm1168_vm13, %v1154_v38, 0.0  ;;  %v1125_v29 = vpop.f32.mrf.mxu2  ;;  %v1282_v38 = vperm.slane %v1280_v25, 0 }
 0x199   : > { %v1180_v41 = vpack.c.bf16 %v1177_v28, %v1177_v28  ;;  %v1126_v13 = vadd.f32 %v1125_v29, %v1108_v23 }
 0x19b   : > { %v1186_v34 = vunpack.c.l.b16 %v1180_v41  ;;  %v1144_v35 = vadd.f32 %v1143_v24, %v1126_v13  ;;  %v1283_v13 = vperm.slane %v1280_v25, 1 }
 0x19d   : > { %v1188_v42 = vpack.c.b16 %v1186_v34, %v1185_v33  ;;  %vm1149_vm0 = vcmp.gt.f32.partialorder %v1144_v35, 0.0  ;;  %v1152_v53 = vmul.f32 0.2, %v1144_v35 }
 0x19e   : > { %v1145_v44 = vpop.f32.mrf.mxu3 }
 0x19f   : > { %v1155_v50 = vsel %vm1149_vm0, %v1144_v35, %v1152_v53  ;;  %v1192_v48 = vshrl.u32 %v1188_v42, 16  ;;  %v1195_v55 = vshll.u32 %v1188_v42, 16  ;;  %v1286_v61 = vrot.slane %v1188_v42, 2 }
 0x1a0   : > { %v1178_v7 = vsel %vm1169_vm1, %v1155_v50, 0.0  ;;  %v1127_v47 = vpop.f32.mrf.mxu2  ;;  %v1207_v62 = vrot.slane %v1188_v42, 7 }
 0x1a1   : > { %v1181_v56 = vpack.c.bf16 %v1178_v7, %v1178_v7  ;;  %v1211_v59 = vrot.slane %v1192_v48, 6  ;;  %v1212_v49 = vrot.slane %v1195_v55, 7  ;;  %v1194_v18 = vrot.slane %v1192_v48, 7 }
 0x1a2   : > { %v1292_v9 = vrot.slane %v1207_v62, 2 }
 0x1a3   : > { %v1187_v57 = vunpack.c.l.b16 %v1181_v56  ;;  %v1213_v5 = vor.u32 %v1212_v49, %v1211_v59  ;;  %v1197_v11 = vor.u32 %v1195_v55, %v1194_v18 }
 0x1a5   : > { %v1189_v60 = vpack.c.b16 %v1187_v57, %v1187_v57  ;;  %v1295_v14 = vrot.slane %v1213_v5, 2  ;;  %v1289_v19 = vrot.slane %v1197_v11, 2 }
 0x1a7   : > { %v1287_v63 = vrot.slane %v1189_v60, 2  ;;  %v1208_v0 = vrot.slane %v1189_v60, 7  ;;  %v1202_v2 = vshll.u32 %v1189_v60, 16  ;;  %v1199_v3 = vshrl.u32 %v1189_v60, 16 }
 0x1a9   : > { %v1288_v46 = vsel %vm539_vm3, %v1286_v61, %v1287_v63  ;;  %v1209_v22 = vsel %vm1206_vm2, %v1207_v62, %v1208_v0  ;;  %v1214_v6 = vrot.slane %v1202_v2, 7  ;;  %v1201_v8 = vrot.slane %v1199_v3, 7 }
 0x1aa   : > { %1630 = vmatmul.bf16.vlgmr.msra.gmra.mxu0 %v1288_v46  ;;  %v1293_v10 = vrot.slane %v1209_v22, 2 }
 0x1ab   : > { %v1215_v12 = vsel %vm1210_vm4, %v1213_v5, %v1214_v6  ;;  %v1204_v17 = vor.u32 %v1202_v2, %v1201_v8 }
 0x1ac   : > { %v1294_v40 = vsel %vm539_vm3, %v1292_v9, %v1293_v10  ;;  %v1296_v15 = vrot.slane %v1215_v12, 2 }
 0x1ad   : > { %1658 = vmatmul.bf16.vlgmr.msra.gmra.mxu2 %v1294_v40  ;;  %v1205_v16 = vsel %vm1190_vm5, %v1194_v18, %v1204_v17 }
 0x1ae   : > { %v1297_v20 = vsel %vm539_vm3, %v1295_v14, %v1296_v15  ;;  %v1290_v21 = vrot.slane %v1205_v16, 2 }
 0x1af   : > { %1672 = vmatmul.bf16.vlgmr.msra.gmra.mxu3 %v1297_v20 }
 0x1b0   : > { %v1291_v45 = vsel %vm539_vm3, %v1289_v19, %v1290_v21 }
 0x1b1   : > { %1644 = vmatmul.bf16.vlgmr.msra.gmra.mxu1 %v1291_v45 }
 0x1ba   : > { %1686 = vmatmul.bf16.vlgmr.msrb.gmra.mxu0 %v1288_v46 }
 0x1bd   : > { %1714 = vmatmul.bf16.vlgmr.msrb.gmra.mxu2 %v1294_v40 }
 0x1bf   : > { %1728 = vmatmul.bf16.vlgmr.msrb.gmra.mxu3 %v1297_v20 }
 0x1c1   : > { %1700 = vmatmul.bf16.vlgmr.msrb.gmra.mxu1 %v1291_v45 }
 0x227   : > { %v1631_v24 = vpop.f32.mrf.mxu0 }
 0x228   : > { %v1632_v28 = vadd.f32 %v1631_v24, %v1282_v38 }
 0x22e   : > { %v1645_v37 = vpop.f32.mrf.mxu1 }
 0x22f   : > { %v1633_v23 = vpop.f32.mrf.mxu0  ;;  %v1646_v30 = vadd.f32 %v1645_v37, %v1632_v28 }
 0x230   : > { %v1659_v26 = vpop.f32.mrf.mxu2  ;;  %v1634_v58 = vadd.f32 %v1633_v23, %v1282_v38 }
 0x231   : > { %v1660_v4 = vadd.f32 %v1659_v26, %v1646_v30 }
 0x232   : > { %v1673_v27 = vpop.f32.mrf.mxu3 }
 0x233   : > { %v1674_v32 = vadd.f32 %v1673_v27, %v1660_v4 }
 0x235   : > { %v1738_v42 = vmul.f32 0.2, %v1674_v32  ;;  %vm1734_vm3 = vcmp.gt.f32.partialorder %v1674_v32, 0.0 }
 0x236   : > { %v1647_v29 = vpop.f32.mrf.mxu1 }
 0x237   : > { %v1687_v52 = vpop.f32.mrf.mxu0  ;;  %v1648_v33 = vadd.f32 %v1647_v29, %v1634_v58  ;;  %v1742_v47 = vsel %vm1734_vm3, %v1674_v32, %v1738_v42 }
 0x238   : > { %v1661_v41 = vpop.f32.mrf.mxu2  ;;  %v1688_v1 = vadd.f32 %v1687_v52, %v1283_v13 }
 0x239   : > { %v1662_v53 = vadd.f32 %v1661_v41, %v1648_v33 }
 0x23a   : > { %v1675_v51 = vpop.f32.mrf.mxu3 }
 0x23b   : > { %v1676_v48 = vadd.f32 %v1675_v51, %v1662_v53 }
 0x23d   : > { %v1740_v61 = vmul.f32 0.2, %v1676_v48  ;;  %vm1736_vm7 = vcmp.gt.f32.partialorder %v1676_v48, 0.0 }
 0x23e   : > { %v1701_v31 = vpop.f32.mrf.mxu1 }
 0x23f   : > { %v1702_v34 = vadd.f32 %v1701_v31, %v1688_v1  ;;  %v1689_v54 = vpop.f32.mrf.mxu0  ;;  %v1744_v63 = vsel %vm1736_vm7, %v1676_v48, %v1740_v61 }
 0x240   : > { %v1715_v35 = vpop.f32.mrf.mxu2  ;;  %v1690_v44 = vadd.f32 %v1689_v54, %v1283_v13 }
 0x241   : > { %v1716_v36 = vadd.f32 %v1715_v35, %v1702_v34 }
 0x242   : > { %v1729_v39 = vpop.f32.mrf.mxu3 }
 0x243   : > { %v1730_v43 = vadd.f32 %v1729_v39, %v1716_v36 }
 0x245   : > { %vm1735_vm6 = vcmp.gt.f32.partialorder %v1730_v43, 0.0  ;;  %v1739_v50 = vmul.f32 0.2, %v1730_v43 }
 0x246   : > { %v1703_v7 = vpop.f32.mrf.mxu1 }
 0x247   : > { %v1743_v55 = vsel %vm1735_vm6, %v1730_v43, %v1739_v50  ;;  %v1704_v56 = vadd.f32 %v1703_v7, %v1690_v44 }
 0x248   : > { %v1746_v57 = vpack.c.bf16 %v1743_v55, %v1742_v47  ;;  %v1717_v59 = vpop.f32.mrf.mxu2 }
 0x249   : > { %v1718_v49 = vadd.f32 %v1717_v59, %v1704_v56 }
 0x24a   : > { %1748 = vst [vmem:[%s329_s27] sm:$0xff] %v1746_v57  ;;  %v1731_v60 = vpop.f32.mrf.mxu3 }
 0x24b   : > { %v1732_v62 = vadd.f32 %v1731_v60, %v1718_v49 }
 0x24d   : > { %vm1737_vm8 = vcmp.gt.f32.partialorder %v1732_v62, 0.0  ;;  %v1741_v18 = vmul.f32 0.2, %v1732_v62 }
 0x24f   : > { %v1745_v0 = vsel %vm1737_vm8, %v1732_v62, %v1741_v18 }
 0x250   : > { %v1747_v2 = vpack.c.bf16 %v1745_v0, %v1744_v63 }
 0x252   : > { %1749 = vst [vmem:[%s329_s27 + $0x8] sm:$0xff] %v1747_v2 }
 0x253   : > { %2737 = shalt.err (!%p2734_p11)
}
 0x254   : > { %s2820_s16 = smov 128   ;;  %s2821_s23 = smov 8  }
 0x255   : > { %2558 = dma.vmem_to_hbm [thread:$0]  (%p2914_p3), %s1767_s9, 256, %s1769_s21, %s1751_s13, %s2820_s16, %s2820_s16, %s2821_s23  }
 0x256 PF: > { %p2575_p12 = scmp.ge.s32.totalorder %s2812_s8, 2  ;;  %s1783_s27 = sand.u32 1, %s2784_s24  }
 0x257   : > { %s1784_s28 = scalar_lea.sflag [#allocation4], %s1783_s27 }
 0x258   : > { %p2568_p13 = pnand %p2575_p12, %p2923_p8 }
 0x25a   : > { %p2569_p0 = pneg %p2568_p13 }
 0x25c   : > { %2779 = dma.done.wait (%p2569_p0), %s1784_s28, 256  }
 0x25d   : > { %2781 = vsyncadd (%p2569_p0), %s1784_s28, 4294967040  ;;  %s22_s8 = sadd.s32 1, %s2812_s8   ;;  %s3207_s27 = sld [smem:[#allocation11_spill]] }
 0x25e   : > { %p19_p1 = scmp.ge.s32.totalorder %s22_s8, 6   ;;  %s3208_s28 = sld [smem:[#allocation12_spill]] }
 0x25f   : > { %s3209_s29 = sld [smem:[#allocation13_spill]]  ;;  %s3211_s24 = smov %s2788_s25 }
 0x260   : > { %s3210_s30 = sld [smem:[#allocation14_spill]]  ;;  %s3212_s25 = smov %s2792_s26 }
 0x261   : > { %s3213_s26 = smov %s2944_s10  ;;  %21 = sbr.rel (!%p19_p1) target bundleno = 7 (0x7), region = 92 }
 0x266   :  { %1790 = vsyncpa [#allocation3], 1 }
 0x267   :  { %1792 = vsyncpa [#allocation3 + $0x1], 1 }
 0x268   :  { %1793 = vsyncpa [#allocation6], 1 }
 0x269   :  { %1794 = vsyncpa [#allocation4], 1 }
 0x26a   :  { %1796 = vsyncpa [#allocation4 + $0x1], 1 }

</bundles_post_ra>
